<compile_context>
chip_gen: v5e
topology: v5e:2x2
jax: 0.10.0
libtpu: 0.0.40
codegen_flags: <defaults>
</compile_context>

<pallas_src>
import functools

import jax
import jax.numpy as jnp
from jax.experimental import pallas as pl
from jax.experimental.pallas import tpu as pltpu


def _mse_mix_kernel(pred_ref, tgt_ref, loss_ref, acc_ref, *,
                    denom, t_total, t_tile, mask_tail):
    # pred_ref: [16, t_tile, 39] VMEM   (model output block)
    # tgt_ref : [32, t_tile, 39] VMEM   (rows 0:16 base frames, 16:32 mix frames)
    # loss_ref: (1, 1) SMEM             (scalar loss, written once at last step)
    # acc_ref : (t_tile, 39) f32 VMEM   (per-(t, feature) partial sum of sq-diffs)
    step = pl.program_id(0)

    @pl.when(step == 0)
    def _init():
        acc_ref[...] = jnp.zeros_like(acc_ref)

    pred = pred_ref[...]                 # [16, t_tile, 39]
    tgt = tgt_ref[...]                   # [32, t_tile, 39]
    ta = tgt[0:16]                       # base frames  [16, t_tile, 39]
    tb = tgt[16:32]                      # mix frames   [16, t_tile, 39]

    # One full-lane square of the whole target block, then 13-wide lane slices
    # (XLU shifts, idle slot) to form the per-class SED energies.
    tgt_sq = tgt * tgt                   # [32, t_tile, 39]
    sa = tgt_sq[0:16]
    sb = tgt_sq[16:32]
    sed = jnp.sqrt(sa[:, :, 0:13] + sa[:, :, 13:26] + sa[:, :, 26:39])
    sed_m = jnp.sqrt(sb[:, :, 0:13] + sb[:, :, 13:26] + sb[:, :, 26:39])
    s = sed + sed_m                      # [16, t_tile, 13]

    # target_sed_mix is 1, masked to 0 where s < 0.5 or s > 1.5.  Broadcast the
    # score to 39 lanes once, then do the mix/residual math on full-width vregs.
    s39 = jnp.concatenate([s, s, s], axis=-1)            # [16, t_tile, 39]
    keep = (s39 >= 0.5) & (s39 <= 1.5)
    target_mix = ta + jnp.where(keep, tb, 0.0)
    d = pred - target_mix
    sq = d * d                                            # [16, t_tile, 39]

    if mask_tail:
        # Last block may extend past T: zero contributions from padded rows
        # (select, so any stale-VMEM NaNs in the pad region are dropped).
        t_idx = step * t_tile + jax.lax.broadcasted_iota(jnp.int32, sq.shape, 1)
        sq = jnp.where(t_idx < t_total, sq, 0.0)

    # Reduce over the frame axis only (major axis -> pure VPU adds); the single
    # cross-lane/sublane reduce + divide happens once at the last step.
    acc_ref[...] += jnp.sum(sq, axis=0)

    @pl.when(step == pl.num_programs(0) - 1)
    def _finalize():
        loss_ref[0, 0] = jnp.sum(acc_ref[...]) / denom


def mse_loss_mix(output, target, *, t_tile_max=512):
    """Pallas equivalent of MSELoss_mix.forward.

    output: [16, T, 39] float32
    target: [32, T, 39] float32 (rows 0:16 = base frames, rows 16:32 = mix part)
    returns scalar float32 loss (mean over all 16*T*39 elements).
    """
    output = output.astype(jnp.float32)
    target = target.astype(jnp.float32)
    assert output.shape[0] == 16 and output.shape[2] == 39, output.shape
    T = output.shape[1]
    assert target.shape == (32, T, 39), target.shape

    # Tile the time axis; (8,128) rule: 39 == full last dim, t_tile is either
    # the full T or a multiple of 8 (512).
    t_tile = T if T <= t_tile_max else t_tile_max
    num_steps = int(pl.cdiv(T, t_tile))
    mask_tail = (T % t_tile) != 0
    denom = float(16 * T * 39)

    kernel = functools.partial(
        _mse_mix_kernel,
        denom=denom, t_total=T, t_tile=t_tile, mask_tail=mask_tail)

    loss = pl.pallas_call(
        kernel,
        out_shape=jax.ShapeDtypeStruct((1, 1), jnp.float32),
        grid_spec=pltpu.PrefetchScalarGridSpec(
            num_scalar_prefetch=0,
            grid=(num_steps,),
            in_specs=[
                pl.BlockSpec((16, t_tile, 39), lambda i: (0, i, 0)),
                pl.BlockSpec((32, t_tile, 39), lambda i: (0, i, 0)),
            ],
            out_specs=pl.BlockSpec(memory_space=pltpu.MemorySpace.SMEM),
            scratch_shapes=[pltpu.VMEM((t_tile, 39), jnp.float32)],
        ),
        compiler_params=pltpu.CompilerParams(
            dimension_semantics=("arbitrary",),
            vmem_limit_bytes=32 * 1024 * 1024,
        ),
    )(output, target)
    return loss[0, 0]


def _reference(output, target):
    # Pure-JAX reference mirroring the PyTorch code, for validation only.
    ta = target[:16]
    tb = target[16:]
    tx, ty, tz = ta[:, :, :13], ta[:, :, 13:26], ta[:, :, 26:39]
    txm, tym, tzm = tb[:, :, :13], tb[:, :, 13:26], tb[:, :, 26:39]
    sed = jnp.sqrt(tx ** 2 + ty ** 2 + tz ** 2)
    sed_m = jnp.sqrt(txm ** 2 + tym ** 2 + tzm ** 2)
    s = sed + sed_m
    mix = jnp.where((s < 0.5) | (s > 1.5), 0.0, 1.0)
    mix39 = jnp.concatenate([mix, mix, mix], axis=-1)
    target_mix = ta + mix39 * tb
    return jnp.mean((output - target_mix) ** 2)


if __name__ == "__main__":
    key = jax.random.PRNGKey(0)
    k1, k2, k3, k4 = jax.random.split(key, 4)

    # Small demo shape (single grid step).
    T = 8
    output = jax.random.normal(k1, (16, T, 39), dtype=jnp.float32)
    # uniform in [0, 0.6) so sed + sed_m straddles the 0.5 / 1.5 thresholds
    target = jax.random.uniform(k2, (32, T, 39), dtype=jnp.float32,
                                minval=0.0, maxval=0.6)
    loss = mse_loss_mix(output, target)
    jax.block_until_ready(loss)
    ref = _reference(output, target)
    assert jnp.allclose(loss, ref, rtol=1e-4, atol=1e-6), (loss, ref)

    # Larger T exercises the tiled reduction grid + tail-mask path.
    T2 = 1032
    output2 = jax.random.normal(k3, (16, T2, 39), dtype=jnp.float32)
    target2 = jax.random.uniform(k4, (32, T2, 39), dtype=jnp.float32,
                                 minval=0.0, maxval=0.6)
    loss2 = mse_loss_mix(output2, target2)
    jax.block_until_ready(loss2)
    ref2 = _reference(output2, target2)
    assert jnp.allclose(loss2, ref2, rtol=1e-4, atol=1e-6), (loss2, ref2)

    print("KERNEL_OK")
</pallas_src>

<mosaic_0001>
module attributes {stable_mosaic.version = 11 : i64} {
  func.func @_mse_mix_kernel(%arg0: i32, %arg1: memref<16x8x39xf32, #tpu.memory_space<vmem>>, %arg2: memref<32x8x39xf32, #tpu.memory_space<vmem>>, %arg3: memref<1x1xf32, #tpu.memory_space<smem>>, %arg4: memref<8x39xf32, #tpu.memory_space<vmem>>) attributes {dimension_semantics = [#tpu.dimension_semantics<arbitrary>], iteration_bounds = array<i64: 1>, scalar_prefetch = 0 : i64, scratch_operands = 1 : i64, tpu.core_type = #tpu.core_type<tc>, window_params = [{transform_indices = @transform_0, window_bounds = array<i64: 16, 8, 39>}, {transform_indices = @transform_1, window_bounds = array<i64: 32, 8, 39>}, {transform_indices = @transform_2, window_bounds = array<i64: 1, 1>}]} {
    %c0_i32 = arith.constant 0 : i32
    %0 = arith.cmpi eq, %arg0, %c0_i32 : i32
    %1 = arith.extui %0 : i1 to i32
    %c0_i32_0 = arith.constant 0 : i32
    %2 = arith.cmpi ne, %1, %c0_i32_0 : i32
    scf.if %2 {
      %cst_15 = arith.constant 0.000000e+00 : f32
      %41 = vector.broadcast %cst_15 : f32 to vector<8x39xf32>
      %c0_16 = arith.constant 0 : index
      %c0_17 = arith.constant 0 : index
      %42 = vector.load %arg4[%c0_16, %c0_17] : memref<8x39xf32, #tpu.memory_space<vmem>>, vector<8x39xf32>
      tpu.vector_store %arg4[%c0_16, %c0_17], %41 {strides = array<i32>} : memref<8x39xf32, #tpu.memory_space<vmem>>, vector<8x39xf32>,
    } else {
    }
    %c0 = arith.constant 0 : index
    %c0_1 = arith.constant 0 : index
    %c0_2 = arith.constant 0 : index
    %3 = vector.load %arg1[%c0, %c0_1, %c0_2] : memref<16x8x39xf32, #tpu.memory_space<vmem>>, vector<16x8x39xf32>
    %c0_3 = arith.constant 0 : index
    %c0_4 = arith.constant 0 : index
    %c0_5 = arith.constant 0 : index
    %4 = vector.load %arg2[%c0_3, %c0_4, %c0_5] : memref<32x8x39xf32, #tpu.memory_space<vmem>>, vector<32x8x39xf32>
    %5 = vector.extract_strided_slice %4 {offsets = [0, 0, 0], sizes = [16, 8, 39], strides = [1, 1, 1]} : vector<32x8x39xf32> to vector<16x8x39xf32>
    %6 = vector.extract_strided_slice %4 {offsets = [16, 0, 0], sizes = [16, 8, 39], strides = [1, 1, 1]} : vector<32x8x39xf32> to vector<16x8x39xf32>
    %7 = arith.mulf %4, %4 : vector<32x8x39xf32>
    %8 = vector.extract_strided_slice %7 {offsets = [0, 0, 0], sizes = [16, 8, 39], strides = [1, 1, 1]} : vector<32x8x39xf32> to vector<16x8x39xf32>
    %9 = vector.extract_strided_slice %7 {offsets = [16, 0, 0], sizes = [16, 8, 39], strides = [1, 1, 1]} : vector<32x8x39xf32> to vector<16x8x39xf32>
    %10 = vector.extract_strided_slice %8 {offsets = [0, 0, 0], sizes = [16, 8, 13], strides = [1, 1, 1]} : vector<16x8x39xf32> to vector<16x8x13xf32>
    %11 = vector.extract_strided_slice %8 {offsets = [0, 0, 13], sizes = [16, 8, 13], strides = [1, 1, 1]} : vector<16x8x39xf32> to vector<16x8x13xf32>
    %12 = arith.addf %10, %11 : vector<16x8x13xf32>
    %13 = vector.extract_strided_slice %8 {offsets = [0, 0, 26], sizes = [16, 8, 13], strides = [1, 1, 1]} : vector<16x8x39xf32> to vector<16x8x13xf32>
    %14 = arith.addf %12, %13 : vector<16x8x13xf32>
    %15 = math.sqrt %14 : vector<16x8x13xf32>
    %16 = vector.extract_strided_slice %9 {offsets = [0, 0, 0], sizes = [16, 8, 13], strides = [1, 1, 1]} : vector<16x8x39xf32> to vector<16x8x13xf32>
    %17 = vector.extract_strided_slice %9 {offsets = [0, 0, 13], sizes = [16, 8, 13], strides = [1, 1, 1]} : vector<16x8x39xf32> to vector<16x8x13xf32>
    %18 = arith.addf %16, %17 : vector<16x8x13xf32>
    %19 = vector.extract_strided_slice %9 {offsets = [0, 0, 26], sizes = [16, 8, 13], strides = [1, 1, 1]} : vector<16x8x39xf32> to vector<16x8x13xf32>
    %20 = arith.addf %18, %19 : vector<16x8x13xf32>
    %21 = math.sqrt %20 : vector<16x8x13xf32>
    %22 = arith.addf %15, %21 : vector<16x8x13xf32>
    %23 = tpu.concatenate %22, %22, %22 in 2 : vector<16x8x13xf32>, vector<16x8x13xf32>, vector<16x8x13xf32> -> vector<16x8x39xf32>
    %cst = arith.constant 5.000000e-01 : f32
    %24 = vector.broadcast %cst : f32 to vector<16x8x39xf32>
    %25 = arith.cmpf oge, %23, %24 : vector<16x8x39xf32>
    %cst_6 = arith.constant 1.500000e+00 : f32
    %26 = vector.broadcast %cst_6 : f32 to vector<16x8x39xf32>
    %27 = arith.cmpf ole, %23, %26 : vector<16x8x39xf32>
    %28 = arith.andi %25, %27 : vector<16x8x39xi1>
    %cst_7 = arith.constant 0.000000e+00 : f32
    %29 = vector.broadcast %cst_7 : f32 to vector<16x8x39xf32>
    %30 = arith.select %28, %6, %29 : vector<16x8x39xi1>, vector<16x8x39xf32>
    %31 = arith.addf %5, %30 : vector<16x8x39xf32>
    %32 = arith.subf %3, %31 : vector<16x8x39xf32>
    %33 = arith.mulf %32, %32 : vector<16x8x39xf32>
    %c0_8 = arith.constant 0 : index
    %c0_9 = arith.constant 0 : index
    %34 = vector.load %arg4[%c0_8, %c0_9] : memref<8x39xf32, #tpu.memory_space<vmem>>, vector<8x39xf32>
    %cst_10 = arith.constant dense<0.000000e+00> : vector<8x39xf32>
    %35 = vector.multi_reduction <add>, %33, %cst_10 [0] : vector<16x8x39xf32> to vector<8x39xf32>
    %36 = arith.addf %34, %35 : vector<8x39xf32>
    %c0_11 = arith.constant 0 : index
    %c0_12 = arith.constant 0 : index
    %37 = vector.load %arg4[%c0_11, %c0_12] : memref<8x39xf32, #tpu.memory_space<vmem>>, vector<8x39xf32>
    tpu.vector_store %arg4[%c0_11, %c0_12], %36 {strides = array<i32>} : memref<8x39xf32, #tpu.memory_space<vmem>>, vector<8x39xf32>,
    %c0_i32_13 = arith.constant 0 : i32
    %38 = arith.cmpi eq, %arg0, %c0_i32_13 : i32
    %39 = arith.extui %38 : i1 to i32
    %c0_i32_14 = arith.constant 0 : i32
    %40 = arith.cmpi ne, %39, %c0_i32_14 : i32
    scf.if %40 {
      %c0_15 = arith.constant 0 : index
      %c0_16 = arith.constant 0 : index
      %41 = vector.load %arg4[%c0_15, %c0_16] : memref<8x39xf32, #tpu.memory_space<vmem>>, vector<8x39xf32>
      %42 = vector.shape_cast %41 : vector<8x39xf32> to vector<1x8x39xf32>
      %cst_17 = arith.constant dense<0.000000e+00> : vector<1xf32>
      %43 = vector.multi_reduction <add>, %42, %cst_17 [1, 2] : vector<1x8x39xf32> to vector<1xf32>
      %44 = vector.shape_cast %43 : vector<1xf32> to vector<1x1x1xf32>
      %45 = vector.extract %44[0, 0, 0] : f32 from vector<1x1x1xf32>
      %cst_18 = arith.constant 4.992000e+03 : f32
      %46 = arith.divf %45, %cst_18 : f32
      %c0_19 = arith.constant 0 : index
      %c0_20 = arith.constant 0 : index
      %47 = memref.load %arg3[%c0_19, %c0_20] : memref<1x1xf32, #tpu.memory_space<smem>>
      memref.store %46, %arg3[%c0_19, %c0_20] : memref<1x1xf32, #tpu.memory_space<smem>>
    } else {
    }
    return
  }
  func.func @transform_0(%arg0: i32) -> (i32, i32, i32) {
    %c0_i32 = arith.constant 0 : i32
    %c0_i32_0 = arith.constant 0 : i32
    %c0_i32_1 = arith.constant 0 : i32
    return %c0_i32, %arg0, %c0_i32_0 : i32, i32, i32
  }
  func.func @transform_1(%arg0: i32) -> (i32, i32, i32) {
    %c0_i32 = arith.constant 0 : i32
    %c0_i32_0 = arith.constant 0 : i32
    %c0_i32_1 = arith.constant 0 : i32
    return %c0_i32, %arg0, %c0_i32_0 : i32, i32, i32
  }
  func.func @transform_2(%arg0: i32) -> (i32, i32) {
    %c0_i32 = arith.constant 0 : i32
    %c0_i32_0 = arith.constant 0 : i32
    %c0_i32_1 = arith.constant 0 : i32
    return %c0_i32, %c0_i32_0 : i32, i32
  }
}

</mosaic_0001>

<bundles_post_ra>
// kernel: tpu_custom_call.1
= control target key start
LH: loop header
LB: loop body
LE: loop exit
PB: predicated region body
PF: predicated region fallthrough
CT: control target
= control target key end

     0   :  { %7 = vsyncpa [#allocation4], 0  ;;  %s2236_s0 = inlined_call_operand.hbm [shape: f32[16,8,39], index: 0, kind: input, shape index: {}]   ;;  %s2237_s1 = inlined_call_operand.hbm [shape: f32[32,8,39], index: 1, kind: input, shape index: {}]   ;;  %s2238_s2 = inlined_call_operand.hbm [shape: f32[1,1], index: 2, kind: output, shape index: {}]  }
   0x1   :  { %8 = vsyncpa [#allocation7], 0 }
   0x2   :  { %9 = vsyncpa [#allocation5], 0  ;;  %s14_s11 = sshll.u32 %s2236_s0, 4  ;;  %s1332_s12 = smov [#allocation3]   ;;  %s15_s11 = int_to_ptr.hbm [resolvable:$true] %s14_s11 }
   0x3   :  { %s16_s13 = sshll.u32 %s1332_s12, 4  ;;  %s27_s16 = sshll.u32 %s2237_s1, 4  ;;  %s17_s13 = int_to_ptr.vmem [resolvable:$true] %s16_s13  ;;  %s28_s16 = int_to_ptr.hbm [resolvable:$true] %s27_s16 }
   0x4   :  { %s1333_s17 = smov 128   ;;  %s1334_s18 = smov 8  }
   0x5   :  { %22 = dma.hbm_to_vmem [thread:$0]  %s15_s11, 2048, %s17_s13, [#allocation4], %s1333_s17, %s1333_s17, %s1334_s18  }
   0x6   :  { %s1335_s19 = smov [#allocation6]  }
   0x7   :  { %s29_s20 = sshll.u32 %s1335_s19, 4  ;;  %s30_s20 = int_to_ptr.vmem [resolvable:$true] %s29_s20 }
   0x8   :  { %35 = dma.hbm_to_vmem [thread:$0]  %s28_s16, 4096, %s30_s20, [#allocation7], %s1333_s17, %s1333_s17, %s1334_s18  }
   0x9   :  { %1326 = dma.done.wait [#allocation4], 2048  }
   0xa   :  { %1327 = vsyncadd [#allocation4], 4294965248 }
   0xb   :  { %1328 = dma.done.wait [#allocation7], 4096  }
   0xc   :  { %1329 = vsyncadd [#allocation7], 4294963200  ;;  %v70_v0 = vld [vmem:[#allocation6 + $0x20] sm:$0xff]  ;;  %v68_v1 = vld [vmem:[#allocation6 + $0x10] sm:$0xff]  ;;  %s1336_s0 = smov 115   ;;  %s1337_s1 = smov 102  }
   0xd   :  { %v66_v2 = vld [vmem:[#allocation6] sm:$0xff]  ;;  %v1364_v3 = vmul.f32 %v70_v0, %v70_v0  ;;  %v1366_v4 = vmul.f32 %v68_v1, %v68_v1  ;;  %v71_v6 = vld [vmem:[#allocation6 + $0x28] sm:$0xff]  ;;  %v69_v7 = vld [vmem:[#allocation6 + $0x18] sm:$0xff]  ;;  %s1338_s21 = smov 13   ;;  %s1339_s22 = smov 26  }
   0xe   :  { %v1368_v5 = vmul.f32 %v66_v2, %v66_v2  ;;  %v67_v8 = vld [vmem:[#allocation6 + $0x8] sm:$0xff]  ;;  %v1376_v9 = vmul.f32 %v71_v6, %v71_v6  ;;  %v1378_v10 = vmul.f32 %v69_v7, %v69_v7  ;;  %v74_v12 = vld [vmem:[#allocation6 + $0x40] sm:$0xff]  ;;  %v73_v13 = vld [vmem:[#allocation6 + $0x38] sm:$0xff]  ;;  %s1141_s25 = sshll.u32 %s2238_s2, 4  ;;  %s1342_s29 = smov [#allocation8]   ;;  %s1142_s25 = int_to_ptr.hbm [resolvable:$true] %s1141_s25 }
   0xf   :  { %154 = vrot.lane.b32.xlu2 %v1364_v3, %s1336_s0  ;;  %150 = vrot.lane.b32.xlu1 %v1366_v4, %s1336_s0  ;;  %v1380_v11 = vmul.f32 %v67_v8, %v67_v8  ;;  %v72_v14 = vld [vmem:[#allocation6 + $0x30] sm:$0xff]  ;;  %v1388_v15 = vmul.f32 %v74_v12, %v74_v12  ;;  %v1390_v16 = vmul.f32 %v73_v13, %v73_v13  ;;  %v77_v18 = vld [vmem:[#allocation6 + $0x58] sm:$0xff]  ;;  %v75_v20 = vld [vmem:[#allocation6 + $0x48] sm:$0xff] }
  0x10   :  { %146 = vrot.lane.b32.xlu0 %v1368_v5, %s1336_s0  ;;  %v1392_v17 = vmul.f32 %v72_v14, %v72_v14  ;;  %v76_v19 = vld [vmem:[#allocation6 + $0x50] sm:$0xff]  ;;  %v1400_v21 = vmul.f32 %v77_v18, %v77_v18  ;;  %v1404_v23 = vmul.f32 %v75_v20, %v75_v20  ;;  %v83_v24 = vld [vmem:[#allocation6 + $0x88] sm:$0xff]  ;;  %v82_v25 = vld [vmem:[#allocation6 + $0x80] sm:$0xff] }
  0x11   :  { %v1402_v22 = vmul.f32 %v76_v19, %v76_v19  ;;  %v78_v26 = vld [vmem:[#allocation6 + $0x60] sm:$0xff]  ;;  %v1412_v27 = vmul.f32 %v83_v24, %v83_v24  ;;  %v1414_v28 = vmul.f32 %v82_v25, %v82_v25  ;;  %v84_v30 = vld [vmem:[#allocation6 + $0x90] sm:$0xff]  ;;  %v85_v32 = vld [vmem:[#allocation6 + $0x98] sm:$0xff] }
  0x12   :  { %v1416_v29 = vmul.f32 %v78_v26, %v78_v26  ;;  %v1424_v31 = vmul.f32 %v84_v30, %v84_v30  ;;  %v1438_v33 = vmul.f32 %v85_v32, %v85_v32  ;;  %v86_v34 = vld [vmem:[#allocation6 + $0xa0] sm:$0xff]  ;;  %v87_v36 = vld [vmem:[#allocation6 + $0xa8] sm:$0xff]  ;;  %v88_v38 = vld [vmem:[#allocation6 + $0xb0] sm:$0xff] }
  0x13   :  { %v1446_v35 = vmul.f32 %v86_v34, %v86_v34  ;;  %v1454_v37 = vmul.f32 %v87_v36, %v87_v36  ;;  %v1462_v39 = vmul.f32 %v88_v38, %v88_v38  ;;  %v89_v40 = vld [vmem:[#allocation6 + $0xb8] sm:$0xff]  ;;  %v90_v43 = vld [vmem:[#allocation6 + $0xc0] sm:$0xff]  ;;  %v91_v46 = vld [vmem:[#allocation6 + $0xc8] sm:$0xff] }
  0x14   :  { %v1470_v41 = vmul.f32 %v89_v40, %v89_v40  ;;  %v1480_v44 = vmul.f32 %v90_v43, %v90_v43  ;;  %v1490_v47 = vmul.f32 %v91_v46, %v91_v46  ;;  %v92_v49 = vld [vmem:[#allocation6 + $0xd0] sm:$0xff]  ;;  %v93_v53 = vld [vmem:[#allocation6 + $0xd8] sm:$0xff]  ;;  %v94_v58 = vld [vmem:[#allocation6 + $0xe0] sm:$0xff] }
  0x15   :  { %v1500_v50 = vmul.f32 %v92_v49, %v92_v49  ;;  %v1510_v55 = vmul.f32 %v93_v53, %v93_v53  ;;  %v79_v60 = vld [vmem:[#allocation6 + $0x68] sm:$0xff]  ;;  %v1518_v61 = vmul.f32 %v94_v58, %v94_v58  ;;  %v80_v12 = vld [vmem:[#allocation6 + $0x70] sm:$0xff]  ;;  %v81_v24 = vld [vmem:[#allocation6 + $0x78] sm:$0xff] }
  0x16   :  { %v1520_v62 = vmul.f32 %v79_v60, %v79_v60  ;;  %v95_v63 = vld [vmem:[#allocation6 + $0xe8] sm:$0xff]  ;;  %v96_v14 = vld [vmem:[#allocation6 + $0xf0] sm:$0xff]  ;;  %v1546_v18 = vmul.f32 %v80_v12, %v80_v12  ;;  %v1561_v34 = vmul.f32 %v81_v24, %v81_v24  ;;  %v97_v46 = vld [vmem:[#allocation6 + $0xf8] sm:$0xff] }
  0x17   :  { %156 = vrot.lane.b32.xlu2 %v1376_v9, %s1336_s0  ;;  %152 = vrot.lane.b32.xlu1 %v1378_v10, %s1336_s0  ;;  %v1534_v6 = vmul.f32 %v95_v63, %v95_v63  ;;  %v1548_v19 = vmul.f32 %v96_v14, %v96_v14  ;;  %v1579_v63 = vmul.f32 %v97_v46, %v97_v46 }
  0x18   :  { %148 = vrot.lane.b32.xlu0 %v1380_v11, %s1336_s0 }
  0x19   :  { %2241 = vst [vmem:[#allocation12_spill] sm:$0xff] %v1548_v19 }
  0x1a   :  { %2242 = vst [vmem:[#allocation13_spill] sm:$0xff] %v1579_v63 }
  0x1f   :  { %162 = vrot.lane.b32.xlu2 %v1388_v15, %s1336_s0  ;;  %160 = vrot.lane.b32.xlu1 %v1390_v16, %s1336_s0 }
  0x20   :  { %158 = vrot.lane.b32.xlu0 %v1392_v17, %s1336_s0 }
  0x27   :  { %168 = vrot.lane.b32.xlu2 %v1400_v21, %s1336_s0  ;;  %166 = vrot.lane.b32.xlu1 %v1402_v22, %s1336_s0 }
  0x28   :  { %164 = vrot.lane.b32.xlu0 %v1404_v23, %s1336_s0 }
  0x2f   :  { %484 = vrot.lane.b32.xlu2 %v1412_v27, %s1336_s0  ;;  %482 = vrot.lane.b32.xlu1 %v1414_v28, %s1336_s0 }
  0x30   :  { %170 = vrot.lane.b32.xlu0 %v1416_v29, %s1336_s0 }
  0x37   :  { %486 = vrot.lane.b32.xlu2 %v1424_v31, %s1336_s0  ;;  %212 = vrot.lane.b32.xlu1 %v1380_v11, %s1337_s1 }
  0x38   :  { %210 = vrot.lane.b32.xlu0 %v1368_v5, %s1337_s1 }
  0x3f   :  { %214 = vrot.lane.b32.xlu2 %v1366_v4, %s1337_s1  ;;  %548 = vrot.lane.b32.xlu1 %v1412_v27, %s1337_s1 }
  0x40   :  { %546 = vrot.lane.b32.xlu0 %v1414_v28, %s1337_s1 }
  0x47   :  { %216 = vrot.lane.b32.xlu2 %v1378_v10, %s1337_s1  ;;  %550 = vrot.lane.b32.xlu1 %v1424_v31, %s1337_s1 }
  0x48   :  { %488 = vrot.lane.b32.xlu0 %v1438_v33, %s1336_s0 }
  0x4f   :  { %218 = vrot.lane.b32.xlu2 %v1364_v3, %s1337_s1  ;;  %552 = vrot.lane.b32.xlu1 %v1438_v33, %s1337_s1 }
  0x50   :  { %490 = vrot.lane.b32.xlu0 %v1446_v35, %s1336_s0 }
  0x57   :  { %220 = vrot.lane.b32.xlu2 %v1376_v9, %s1337_s1  ;;  %554 = vrot.lane.b32.xlu1 %v1446_v35, %s1337_s1 }
  0x58   :  { %492 = vrot.lane.b32.xlu0 %v1454_v37, %s1336_s0 }
  0x5f   :  { %222 = vrot.lane.b32.xlu2 %v1392_v17, %s1337_s1  ;;  %556 = vrot.lane.b32.xlu1 %v1454_v37, %s1337_s1 }
  0x60   :  { %494 = vrot.lane.b32.xlu0 %v1462_v39, %s1336_s0 }
  0x67   :  { %224 = vrot.lane.b32.xlu2 %v1390_v16, %s1337_s1  ;;  %558 = vrot.lane.b32.xlu1 %v1462_v39, %s1337_s1 }
  0x68   :  { %496 = vrot.lane.b32.xlu0 %v1470_v41, %s1336_s0 }
  0x69   :  { %v1478_v42 = vpop.permute.xlu2 %154 }
  0x6f   :  { %226 = vrot.lane.b32.xlu2 %v1388_v15, %s1337_s1  ;;  %560 = vrot.lane.b32.xlu1 %v1470_v41, %s1337_s1 }
  0x70   :  { %498 = vrot.lane.b32.xlu0 %v1480_v44, %s1336_s0 }
  0x71   :  { %v1488_v45 = vpop.permute.xlu2 %156 }
  0x77   :  { %228 = vrot.lane.b32.xlu2 %v1404_v23, %s1337_s1  ;;  %562 = vrot.lane.b32.xlu1 %v1480_v44, %s1337_s1 }
  0x78   :  { %500 = vrot.lane.b32.xlu0 %v1490_v47, %s1336_s0 }
  0x79   :  { %v1498_v48 = vpop.permute.xlu2 %162 }
  0x7f   :  { %230 = vrot.lane.b32.xlu2 %v1402_v22, %s1337_s1  ;;  %564 = vrot.lane.b32.xlu1 %v1490_v47, %s1337_s1 }
  0x80   :  { %502 = vrot.lane.b32.xlu0 %v1500_v50, %s1336_s0 }
  0x81   :  { %v1508_v51 = vpop.permute.xlu2 %168  ;;  %v151_v52 = vpop.permute.xlu1 %150 }
  0x82   :  { %v147_v54 = vpop.permute.xlu0 %146  ;;  %v196_v20 = vadd.f32 %v151_v52, %v1366_v4 }
  0x83   :  { %v194_v36 = vadd.f32 %v147_v54, %v1368_v5 }
  0x87   :  { %232 = vrot.lane.b32.xlu2 %v1400_v21, %s1337_s1  ;;  %566 = vrot.lane.b32.xlu1 %v1500_v50, %s1337_s1 }
  0x88   :  { %504 = vrot.lane.b32.xlu0 %v1510_v55, %s1336_s0 }
  0x89   :  { %v485_v56 = vpop.permute.xlu2 %484  ;;  %v153_v57 = vpop.permute.xlu1 %152 }
  0x8a   :  { %v149_v59 = vpop.permute.xlu0 %148  ;;  %v197_v38 = vadd.f32 %v153_v57, %v1378_v10  ;;  %v531_v10 = vadd.f32 %v485_v56, %v1412_v27 }
  0x8b   :  { %v195_v4 = vadd.f32 %v149_v59, %v1380_v11 }
  0x8f   :  { %568 = vrot.lane.b32.xlu1 %v1510_v55, %s1337_s1  ;;  %172 = vrot.lane.b32.xlu2 %v1520_v62, %s1336_s0 }
  0x90   :  { %506 = vrot.lane.b32.xlu0 %v1518_v61, %s1336_s0 }
  0x91   :  { %v1528_v0 = vpop.permute.xlu2 %486  ;;  %v1530_v1 = vpop.permute.xlu1 %160 }
  0x92   :  { %v1532_v2 = vpop.permute.xlu0 %158 }
  0x97   :  { %508 = vrot.lane.b32.xlu1 %v1534_v6, %s1336_s0  ;;  %570 = vrot.lane.b32.xlu2 %v1518_v61, %s1337_s1 }
  0x98   :  { %234 = vrot.lane.b32.xlu0 %v1416_v29, %s1337_s1 }
  0x99   :  { %v215_v7 = vpop.permute.xlu2 %214  ;;  %v1542_v8 = vpop.permute.xlu1 %166 }
  0x9a   :  { %v1544_v13 = vpop.permute.xlu0 %164  ;;  %v1557_v25 = vadd.f32 %v215_v7, %v196_v20 }
  0x9c   :  { %1168 = vrsqrt.f32 %v1557_v25  ;;  %vm305_vm8 = vcmp.eq.f32.partialorder %v1557_v25, inf  ;;  %vm307_vm9 = vcmp.eq.f32.partialorder %v1557_v25, 0.0 }
  0x9f   :  { %236 = vrot.lane.b32.xlu1 %v1520_v62, %s1337_s1  ;;  %510 = vrot.lane.b32.xlu2 %v1548_v19, %s1336_s0 }
  0xa0   :  { %174 = vrot.lane.b32.xlu0 %v1546_v18, %s1336_s0 }
  0xa1   :  { %v217_v26 = vpop.permute.xlu2 %216  ;;  %v483_v30 = vpop.permute.xlu1 %482 }
  0xa2   :  { %v1559_v32 = vpop.permute.xlu0 %170  ;;  %v1169_v53 = vpop.eup %1168  ;;  %v1575_v58 = vadd.f32 %v217_v26, %v197_v38  ;;  %v530_v11 = vadd.f32 %v483_v30, %v1414_v28  ;;  %v198_v26 = vadd.f32 %v1478_v42, %v1364_v3 }
  0xa3   :  { %v299_v5 = vmul.f32 %v1169_v53, %v1557_v25 }
  0xa4   :  { %vm317_vm12 = vcmp.eq.f32.partialorder %v1575_v58, inf  ;;  %vm319_vm13 = vcmp.eq.f32.partialorder %v1575_v58, 0.0 }
  0xa5   :  { %v300_v12 = vmul.f32 %v1169_v53, %v299_v5 }
  0xa7   :  { %176 = vrot.lane.b32.xlu1 %v1561_v34, %s1336_s0  ;;  %238 = vrot.lane.b32.xlu2 %v1546_v18, %s1337_s1 }
  0xa8   :  { %572 = vrot.lane.b32.xlu0 %v1534_v6, %s1337_s1 }
  0xa9   :  { %v219_v40 = vpop.permute.xlu2 %218  ;;  %v213_v43 = vpop.permute.xlu1 %212 }
  0xaa   :  { %v1573_v49 = vadd.f32 %v213_v43, %v195_v4  ;;  %v211_v52 = vpop.permute.xlu0 %210  ;;  %v1604_v30 = vadd.f32 %v219_v40, %v198_v26  ;;  %v532_v43 = vadd.f32 %v1528_v0, %v1424_v31 }
  0xab   :  { %v1577_v60 = vadd.f32 %v211_v52, %v194_v36  ;;  %v301_v36 = vmul.f32 0.5, %v300_v12 }
  0xac   :  { %1170 = vrsqrt.f32 %v1573_v49  ;;  %vm293_vm0 = vcmp.eq.f32.partialorder %v1573_v49, inf  ;;  %vm295_vm1 = vcmp.eq.f32.partialorder %v1573_v49, 0.0 }
  0xad   :  { %1172 = vrsqrt.f32 %v1577_v60  ;;  %vm281_vm2 = vcmp.eq.f32.partialorder %v1577_v60, inf  ;;  %vm283_vm3 = vcmp.eq.f32.partialorder %v1577_v60, 0.0 }
  0xae   :  { %1174 = vrsqrt.f32 %v1575_v58 }
  0xaf   :  { %574 = vrot.lane.b32.xlu1 %v1548_v19, %s1337_s1  ;;  %240 = vrot.lane.b32.xlu2 %v1561_v34, %s1337_s1 }
  0xb0   :  { %512 = vrot.lane.b32.xlu0 %v1579_v63, %s1336_s0 }
  0xb1   :  { %v221_v54 = vpop.permute.xlu2 %220  ;;  %v549_v57 = vpop.permute.xlu1 %548 }
  0xb2   :  { %v1593_v59 = vadd.f32 %v549_v57, %v531_v10  ;;  %v547_v7 = vpop.permute.xlu0 %546  ;;  %v1171_v14 = vpop.eup %1170  ;;  %v302_v57 = vsub.f32 1.5, %v301_v36 }
  0xb3   :  { %v1595_v20 = vadd.f32 %v547_v7, %v530_v11  ;;  %v1173_v24 = vpop.eup %1172  ;;  %v287_v27 = vmul.f32 %v1171_v14, %v1573_v49 }
  0xb4   :  { %v1600_v56 = vpop.eup %1174  ;;  %1176 = vrsqrt.f32 %v1593_v59  ;;  %v275_v28 = vmul.f32 %v1173_v24, %v1577_v60  ;;  %v303_v36 = vmul.f32 %v1169_v53, %v302_v57  ;;  %v284_v53 = vand.u32 2147483648, %v1577_v60 }
  0xb5   :  { %1178 = vrsqrt.f32 %v1595_v20  ;;  %v288_v4 = vmul.f32 %v1171_v14, %v287_v27  ;;  %v311_v42 = vmul.f32 %v1600_v56, %v1575_v58  ;;  %v199_v27 = vadd.f32 %v1488_v45, %v1376_v9 }
  0xb6   :  { %v276_v38 = vmul.f32 %v1173_v24, %v275_v28  ;;  %1180 = vrsqrt.f32 %v1604_v30  ;;  %v296_v45 = vand.u32 2147483648, %v1573_v49  ;;  %vm629_vm4 = vcmp.eq.f32.partialorder %v1593_v59, inf }
  0xb7   :  { %v289_v3 = vmul.f32 0.5, %v288_v4  ;;  %v312_v26 = vmul.f32 %v1600_v56, %v311_v42  ;;  %v200_v4 = vadd.f32 %v1532_v2, %v1392_v17  ;;  %vm631_vm5 = vcmp.eq.f32.partialorder %v1593_v59, 0.0 }
  0xb8   :  { %576 = vrot.lane.b32.xlu0 %v1579_v63, %s1337_s1  ;;  %v277_v5 = vmul.f32 0.5, %v276_v38  ;;  %vm617_vm6 = vcmp.eq.f32.partialorder %v1595_v20, inf  ;;  %vm619_vm7 = vcmp.eq.f32.partialorder %v1595_v20, 0.0 }
  0xb9   :  { %v223_v46 = vpop.permute.xlu2 %222  ;;  %v551_v52 = vpop.permute.xlu1 %550  ;;  %v290_v11 = vsub.f32 1.5, %v289_v3  ;;  %v1624_v3 = vadd.f32 %v221_v54, %v199_v27  ;;  %v1632_v19 = vmul.f32 0.5, %v312_v26 }
  0xba   :  { %v1614_v40 = vadd.f32 %v551_v52, %v532_v43  ;;  %v489_v10 = vpop.permute.xlu0 %488  ;;  %v1177_v7 = vpop.eup %1176  ;;  %v278_v12 = vsub.f32 1.5, %v277_v5 }
  0xbb   :  { %v1179_v31 = vpop.eup %1178  ;;  %v623_v0 = vmul.f32 %v1177_v7, %v1593_v59  ;;  %v291_v38 = vmul.f32 %v1171_v14, %v290_v11  ;;  %v533_v9 = vadd.f32 %v489_v10, %v1438_v33  ;;  %v304_v11 = vmul.f32 %v303_v36, %v1557_v25 }
  0xbc   :  { %1182 = vrsqrt.f32 %v1614_v40  ;;  %v611_v28 = vmul.f32 %v1179_v31, %v1595_v20  ;;  %v279_v52 = vmul.f32 %v1173_v24, %v278_v12  ;;  %v1627_v42 = vpop.eup %1180  ;;  %vm641_vm10 = vcmp.eq.f32.partialorder %v1614_v40, inf }
  0xbd   :  { %v624_v43 = vmul.f32 %v1177_v7, %v623_v0  ;;  %v292_v24 = vmul.f32 %v291_v38, %v1573_v49  ;;  %1184 = vrsqrt.f32 %v1624_v3  ;;  %v323_v26 = vmul.f32 %v1627_v42, %v1604_v30 }
  0xbe   :  { %v612_v5 = vmul.f32 %v1179_v31, %v611_v28  ;;  %v280_v12 = vmul.f32 %v279_v52, %v1577_v60  ;;  %vm643_vm11 = vcmp.eq.f32.partialorder %v1614_v40, 0.0 }
  0xbf   :  { %v625_v63 = vmul.f32 0.5, %v624_v43  ;;  %v314_v43 = vsub.f32 1.5, %v1632_v19  ;;  %v294_v36 = vsel %vm293_vm0, %v1573_v49, %v292_v24  ;;  %vm329_vm0 = vcmp.eq.f32.partialorder %v1604_v30, inf }
  0xc0   :  { %v613_v54 = vmul.f32 0.5, %v612_v5  ;;  %v282_v19 = vsel %vm281_vm2, %v1577_v60, %v280_v12  ;;  %v297_v12 = vsel %vm295_vm1, %v296_v45, %v294_v36  ;;  %vm331_vm1 = vcmp.eq.f32.partialorder %v1604_v30, 0.0 }
  0xc1   :  { %v1634_v17 = vpop.permute.xlu2 %224  ;;  %v553_v2 = vpop.permute.xlu1 %552  ;;  %v626_v10 = vsub.f32 1.5, %v625_v63  ;;  %v632_v63 = vand.u32 2147483648, %v1593_v59  ;;  %v315_v36 = vmul.f32 %v1600_v56, %v314_v43 }
  0xc2   :  { %v1639_v14 = vadd.f32 %v553_v2, %v533_v9  ;;  %v491_v33 = vpop.permute.xlu0 %490  ;;  %v1183_v57 = vpop.eup %1182  ;;  %v614_v0 = vsub.f32 1.5, %v613_v54  ;;  %v620_v9 = vand.u32 2147483648, %v1595_v20  ;;  %v324_v2 = vmul.f32 %v1627_v42, %v323_v26 }
  0xc3   :  { %v627_v27 = vmul.f32 %v1177_v7, %v626_v10  ;;  %v635_v28 = vmul.f32 %v1183_v57, %v1614_v40  ;;  %v534_v54 = vadd.f32 %v491_v33, %v1446_v35  ;;  %v285_v33 = vsel %vm283_vm3, %v284_v53, %v282_v19 }
  0xc4   :  { %1186 = vrsqrt.f32 %v1639_v14  ;;  %v615_v38 = vmul.f32 %v1179_v31, %v614_v0  ;;  %v1664_v31 = vadd.f32 %v223_v46, %v200_v4  ;;  %v1670_v0 = vpop.eup %1184  ;;  %v308_v53 = vand.u32 2147483648, %v1557_v25 }
  0xc5   :  { %v628_v52 = vmul.f32 %v627_v27, %v1593_v59  ;;  %v636_v7 = vmul.f32 %v1183_v57, %v635_v28  ;;  %v335_v60 = vmul.f32 %v1670_v0, %v1624_v3  ;;  %vm653_vm14 = vcmp.eq.f32.partialorder %v1639_v14, inf }
  0xc6   :  { %v616_v5 = vmul.f32 %v615_v38, %v1595_v20  ;;  %1188 = vrsqrt.f32 %v1664_v31  ;;  %vm655_vm15 = vcmp.eq.f32.partialorder %v1639_v14, 0.0 }
  0xc7   :  { %v630_v24 = vsel %vm629_vm4, %v1593_v59, %v628_v52  ;;  %v637_v10 = vmul.f32 0.5, %v636_v7  ;;  %v325_v59 = vmul.f32 0.5, %v324_v2  ;;  %vm341_vm4 = vcmp.eq.f32.partialorder %v1624_v3, inf }
  0xc8   :  { %v633_v28 = vsel %vm631_vm5, %v632_v63, %v630_v24  ;;  %v618_v26 = vsel %vm617_vm6, %v1595_v20, %v616_v5  ;;  %v201_v63 = vadd.f32 %v1530_v1, %v1390_v16  ;;  %v306_v1 = vsel %vm305_vm8, %v1557_v25, %v304_v11 }
  0xc9   :  { %v555_v27 = vpop.permute.xlu1 %554  ;;  %v1680_v4 = vadd.f32 %v633_v28, %v297_v12  ;;  %v621_v38 = vsel %vm619_vm7, %v620_v9, %v618_v26  ;;  %v227_v7 = vpop.permute.xlu2 %226  ;;  %v638_v45 = vsub.f32 1.5, %v637_v10  ;;  %v644_v9 = vand.u32 2147483648, %v1614_v40 }
  0xca   :  { %v1678_v46 = vadd.f32 %v555_v27, %v534_v54  ;;  %v493_v35 = vpop.permute.xlu0 %492  ;;  %v1187_v52 = vpop.eup %1186  ;;  %v1684_v49 = vadd.f32 %v621_v38, %v285_v33  ;;  %v326_v2 = vsub.f32 1.5, %v325_v59  ;;  %v1708_v54 = vadd.f32 %v1634_v17, %v201_v63 }
  0xcb   :  { %836 = vrot.lane.b32.xlu2 %v1680_v4, %s1338_s21  ;;  %v647_v20 = vmul.f32 %v1187_v52, %v1639_v14  ;;  %v639_v16 = vmul.f32 %v1183_v57, %v638_v45  ;;  %v535_v24 = vadd.f32 %v493_v35, %v1454_v37  ;;  %v336_v11 = vmul.f32 %v1670_v0, %v335_v60 }
  0xcc   :  { %1190 = vrsqrt.f32 %v1678_v46  ;;  %882 = vrot.lane.b32.xlu0 %v1684_v49, %s1339_s22  ;;  %834 = vrot.lane.b32.xlu1 %v1684_v49, %s1338_s21  ;;  %v309_v25 = vsel %vm307_vm9, %v308_v53, %v306_v1  ;;  %v1714_v43 = vpop.eup %1188  ;;  %v316_v17 = vmul.f32 %v315_v36, %v1575_v58  ;;  %v202_v37 = vadd.f32 %v1498_v48, %v1388_v15 }
  0xcd   :  { %v648_v19 = vmul.f32 %v1187_v52, %v647_v20  ;;  %v640_v5 = vmul.f32 %v639_v16, %v1614_v40  ;;  %v327_v38 = vmul.f32 %v1627_v42, %v326_v2  ;;  %1192 = vrsqrt.f32 %v1708_v54 }
  0xce   :  { %v337_v59 = vmul.f32 0.5, %v336_v11  ;;  %v1727_v63 = vadd.f32 %v227_v7, %v202_v37  ;;  %v347_v15 = vmul.f32 %v1714_v43, %v1664_v31  ;;  %v318_v48 = vsel %vm317_vm12, %v1575_v58, %v316_v17 }
  0xcf   :  { %v649_v57 = vmul.f32 0.5, %v648_v19  ;;  %v642_v56 = vsel %vm641_vm10, %v1614_v40, %v640_v5  ;;  %v320_v42 = vand.u32 2147483648, %v1575_v58  ;;  %v656_v60 = vand.u32 2147483648, %v1639_v14 }
  0xd0   :  { %v645_v28 = vsel %vm643_vm11, %v644_v9, %v642_v56  ;;  %v328_v16 = vmul.f32 %v327_v38, %v1604_v30  ;;  %v338_v19 = vsub.f32 1.5, %v337_v59  ;;  %v203_v56 = vadd.f32 %v1544_v13, %v1404_v23 }
  0xd1   :  { %v557_v10 = vpop.permute.xlu1 %556  ;;  %v650_v26 = vsub.f32 1.5, %v649_v57  ;;  %v1721_v35 = vadd.f32 %v645_v28, %v309_v25  ;;  %v229_v20 = vpop.permute.xlu2 %228  ;;  %v321_v9 = vsel %vm319_vm13, %v320_v42, %v318_v48  ;;  %v332_v58 = vand.u32 2147483648, %v1604_v30 }
  0xd2   :  { %v1716_v27 = vadd.f32 %v557_v10, %v535_v24  ;;  %v495_v12 = vpop.permute.xlu0 %494  ;;  %v1191_v33 = vpop.eup %1190  ;;  %v348_v24 = vmul.f32 %v1714_v43, %v347_v15  ;;  %v339_v17 = vmul.f32 %v1670_v0, %v338_v19  ;;  %v1765_v37 = vadd.f32 %v229_v20, %v203_v56 }
  0xd3   :  { %v651_v40 = vmul.f32 %v1187_v52, %v650_v26  ;;  %v659_v45 = vmul.f32 %v1191_v33, %v1678_v46  ;;  %838 = vrot.lane.b32.xlu2 %v1721_v35, %s1338_s21  ;;  %v536_v1 = vadd.f32 %v495_v12, %v1462_v39  ;;  %v1752_v57 = vpop.eup %1192  ;;  %v330_v12 = vsel %vm329_vm0, %v1604_v30, %v328_v16 }
  0xd4   :  { %1194 = vrsqrt.f32 %v1716_v27  ;;  %886 = vrot.lane.b32.xlu0 %v1721_v35, %s1339_s22  ;;  %884 = vrot.lane.b32.xlu1 %v1680_v4, %s1339_s22  ;;  %v349_v38 = vmul.f32 0.5, %v348_v24  ;;  %v359_v23 = vmul.f32 %v1752_v57, %v1708_v54  ;;  %vm665_vm2 = vcmp.eq.f32.partialorder %v1678_v46, inf }
  0xd5   :  { %v652_v52 = vmul.f32 %v651_v40, %v1639_v14  ;;  %v660_v7 = vmul.f32 %v1191_v33, %v659_v45  ;;  %1196 = vrsqrt.f32 %v1727_v63  ;;  %v333_v45 = vsel %vm331_vm1, %v332_v58, %v330_v12 }
  0xd6   :  { %vm667_vm3 = vcmp.eq.f32.partialorder %v1678_v46, 0.0  ;;  %v668_v59 = vand.u32 2147483648, %v1678_v46  ;;  %v340_v48 = vmul.f32 %v339_v17, %v1624_v3  ;;  %v204_v19 = vadd.f32 %v1542_v8, %v1402_v22 }
  0xd7   :  { %v654_v53 = vsel %vm653_vm14, %v1639_v14, %v652_v52  ;;  %v661_v36 = vmul.f32 0.5, %v660_v7  ;;  %v350_v7 = vsub.f32 1.5, %v349_v38  ;;  %vm343_vm5 = vcmp.eq.f32.partialorder %v1624_v3, 0.0 }
  0xd8   :  { %v657_v2 = vsel %vm655_vm15, %v656_v60, %v654_v53  ;;  %v360_v60 = vmul.f32 %v1752_v57, %v359_v23  ;;  %v342_v22 = vsel %vm341_vm4, %v1624_v3, %v340_v48  ;;  %v344_v58 = vand.u32 2147483648, %v1624_v3 }
  0xd9   :  { %v559_v5 = vpop.permute.xlu1 %558  ;;  %v1756_v25 = vadd.f32 %v657_v2, %v321_v9  ;;  %v662_v39 = vsub.f32 1.5, %v661_v36  ;;  %v231_v40 = vpop.permute.xlu2 %230  ;;  %v351_v2 = vmul.f32 %v1714_v43, %v350_v7  ;;  %vm677_vm6 = vcmp.eq.f32.partialorder %v1716_v27, inf }
  0xda   :  { %v1754_v11 = vadd.f32 %v559_v5, %v536_v1  ;;  %v497_v10 = vpop.permute.xlu0 %496  ;;  %v1195_v14 = vpop.eup %1194  ;;  %v361_v24 = vmul.f32 0.5, %v360_v60  ;;  %v1808_v56 = vadd.f32 %v231_v40, %v204_v19  ;;  %v680_v43 = vand.u32 2147483648, %v1716_v27 }
  0xdb   :  { %v663_v28 = vmul.f32 %v1191_v33, %v662_v39  ;;  %v671_v26 = vmul.f32 %v1195_v14, %v1716_v27  ;;  %888 = vrot.lane.b32.xlu2 %v1756_v25, %s1339_s22  ;;  %v1776_v33 = vpop.eup %1196  ;;  %v537_v20 = vadd.f32 %v497_v10, %v1470_v41  ;;  %vm679_vm7 = vcmp.eq.f32.partialorder %v1716_v27, 0.0 }
  0xdc   :  { %1198 = vrsqrt.f32 %v1754_v11  ;;  %840 = vrot.lane.b32.xlu1 %v1756_v25, %s1338_s21  ;;  %v371_v41 = vmul.f32 %v1776_v33, %v1727_v63  ;;  %v345_v23 = vsel %vm343_vm5, %v344_v58, %v342_v22  ;;  %v362_v40 = vsub.f32 1.5, %v361_v24 }
  0xdd   :  { %v664_v13 = vmul.f32 %v663_v28, %v1678_v46  ;;  %v672_v0 = vmul.f32 %v1195_v14, %v671_v26  ;;  %1200 = vrsqrt.f32 %v1765_v37  ;;  %v205_v3 = vadd.f32 %v1508_v51, %v1400_v21 }
  0xde   :  { %v372_v39 = vmul.f32 %v1776_v33, %v371_v41  ;;  %vm353_vm8 = vcmp.eq.f32.partialorder %v1664_v31, inf  ;;  %vm355_vm9 = vcmp.eq.f32.partialorder %v1664_v31, 0.0  ;;  %v363_v7 = vmul.f32 %v1752_v57, %v362_v40 }
  0xdf   :  { %v666_v15 = vsel %vm665_vm2, %v1678_v46, %v664_v13  ;;  %v673_v30 = vmul.f32 0.5, %v672_v0  ;;  %v352_v0 = vmul.f32 %v351_v2, %v1664_v31  ;;  %vm689_vm10 = vcmp.eq.f32.partialorder %v1754_v11, inf }
  0xe0   :  { %v669_v52 = vsel %vm667_vm3, %v668_v59, %v666_v15  ;;  %v373_v15 = vmul.f32 0.5, %v372_v39  ;;  %v692_v41 = vand.u32 2147483648, %v1754_v11  ;;  %vm691_vm11 = vcmp.eq.f32.partialorder %v1754_v11, 0.0 }
  0xe1   :  { %v561_v42 = vpop.permute.xlu1 %560  ;;  %v1788_v53 = vadd.f32 %v669_v52, %v333_v45  ;;  %v674_v36 = vsub.f32 1.5, %v673_v30  ;;  %v233_v26 = vpop.permute.xlu2 %232  ;;  %v356_v52 = vand.u32 2147483648, %v1664_v31  ;;  %v354_v21 = vsel %vm353_vm8, %v1664_v31, %v352_v0 }
  0xe2   :  { %v1786_v16 = vadd.f32 %v561_v42, %v537_v20  ;;  %v499_v1 = vpop.permute.xlu0 %498  ;;  %v1199_v46 = vpop.eup %1198  ;;  %vm365_vm12 = vcmp.eq.f32.partialorder %v1708_v54, inf  ;;  %vm367_vm13 = vcmp.eq.f32.partialorder %v1708_v54, 0.0  ;;  %vm377_vm0 = vcmp.eq.f32.partialorder %v1727_v63, inf }
  0xe3   :  { %842 = vrot.lane.b32.xlu0 %v1788_v53, %s1338_s21  ;;  %v675_v5 = vmul.f32 %v1195_v14, %v674_v36  ;;  %v683_v9 = vmul.f32 %v1199_v46, %v1754_v11  ;;  %v1806_v14 = vpop.eup %1200  ;;  %v538_v12 = vadd.f32 %v499_v1, %v1480_v44  ;;  %v374_v1 = vsub.f32 1.5, %v373_v15 }
  0xe4   :  { %1202 = vrsqrt.f32 %v1786_v16  ;;  %890 = vrot.lane.b32.xlu1 %v1788_v53, %s1339_s22  ;;  %v1840_v36 = vadd.f32 %v233_v26, %v205_v3  ;;  %v357_v24 = vsel %vm355_vm9, %v356_v52, %v354_v21  ;;  %vm701_vm14 = vcmp.eq.f32.partialorder %v1786_v16, inf }
  0xe5   :  { %v676_v8 = vmul.f32 %v675_v5, %v1716_v27  ;;  %v684_v10 = vmul.f32 %v1199_v46, %v683_v9  ;;  %1204 = vrsqrt.f32 %v1808_v56  ;;  %v704_v40 = vand.u32 2147483648, %v1786_v16 }
  0xe6   :  { %vm703_vm15 = vcmp.eq.f32.partialorder %v1786_v16, 0.0  ;;  %vm379_vm1 = vcmp.eq.f32.partialorder %v1727_v63, 0.0  ;;  %vm389_vm4 = vcmp.eq.f32.partialorder %v1765_v37, inf  ;;  %vm391_vm5 = vcmp.eq.f32.partialorder %v1765_v37, 0.0 }
  0xe7   :  { %v678_v28 = vsel %vm677_vm6, %v1716_v27, %v676_v8  ;;  %v685_v17 = vmul.f32 0.5, %v684_v10  ;;  %v383_v27 = vmul.f32 %v1806_v14, %v1765_v37  ;;  %v364_v10 = vmul.f32 %v363_v7, %v1708_v54 }
  0xe8   :  { %v681_v13 = vsel %vm679_vm7, %v680_v43, %v678_v28  ;;  %vm401_vm8 = vcmp.eq.f32.partialorder %v1808_v56, inf }
  0xe9   :  { %v563_v38 = vpop.permute.xlu1 %562  ;;  %v1821_v20 = vadd.f32 %v681_v13, %v345_v23  ;;  %v686_v44 = vsub.f32 1.5, %v685_v17  ;;  %v1852_v8 = vpop.permute.xlu2 %172  ;;  %v368_v23 = vand.u32 2147483648, %v1708_v54 }
  0xea   :  { %v1819_v45 = vadd.f32 %v563_v38, %v538_v12  ;;  %v501_v59 = vpop.permute.xlu0 %500  ;;  %v1203_v48 = vpop.eup %1202  ;;  %v366_v38 = vsel %vm365_vm12, %v1708_v54, %v364_v10  ;;  %vm413_vm12 = vcmp.eq.f32.partialorder %v1840_v36, inf }
  0xeb   :  { %892 = vrot.lane.b32.xlu0 %v1821_v20, %s1339_s22  ;;  %844 = vrot.lane.b32.xlu2 %v1821_v20, %s1338_s21  ;;  %v687_v30 = vmul.f32 %v1199_v46, %v686_v44  ;;  %v695_v42 = vmul.f32 %v1203_v48, %v1786_v16  ;;  %v384_v46 = vmul.f32 %v1806_v14, %v383_v27  ;;  %v1848_v9 = vpop.eup %1204 }
  0xec   :  { %1206 = vrsqrt.f32 %v1819_v45  ;;  %v539_v19 = vadd.f32 %v501_v59, %v1490_v47  ;;  %v395_v26 = vmul.f32 %v1848_v9, %v1808_v56  ;;  %vm713_vm2 = vcmp.eq.f32.partialorder %v1819_v45, inf }
  0xed   :  { %v688_v51 = vmul.f32 %v687_v30, %v1754_v11  ;;  %v696_v60 = vmul.f32 %v1203_v48, %v695_v42  ;;  %1208 = vrsqrt.f32 %v1840_v36  ;;  %v385_v31 = vmul.f32 0.5, %v384_v46 }
  0xee   :  { %v396_v27 = vmul.f32 %v1848_v9, %v395_v26  ;;  %v369_v42 = vsel %vm367_vm13, %v368_v23, %v366_v38  ;;  %vm715_vm3 = vcmp.eq.f32.partialorder %v1819_v45, 0.0 }
  0xef   :  { %v690_v5 = vsel %vm689_vm10, %v1754_v11, %v688_v51  ;;  %v697_v57 = vmul.f32 0.5, %v696_v60  ;;  %v375_v11 = vmul.f32 %v1776_v33, %v374_v1  ;;  %v386_v44 = vsub.f32 1.5, %v385_v31 }
  0xf0   :  { %v693_v22 = vsel %vm691_vm11, %v692_v41, %v690_v5  ;;  %v380_v5 = vand.u32 2147483648, %v1727_v63  ;;  %vm403_vm10 = vcmp.eq.f32.partialorder %v1808_v56, 0.0 }
  0xf1   :  { %v565_v2 = vpop.permute.xlu1 %564  ;;  %v1857_v43 = vadd.f32 %v693_v22, %v357_v24  ;;  %v698_v12 = vsub.f32 1.5, %v697_v57  ;;  %v376_v0 = vmul.f32 %v375_v11, %v1727_v63  ;;  %v387_v46 = vmul.f32 %v1806_v14, %v386_v44 }
  0xf2   :  { %v1207_v39 = vpop.eup %1206  ;;  %v1855_v58 = vadd.f32 %v565_v2, %v539_v19  ;;  %v503_v47 = vpop.permute.xlu0 %502  ;;  %v397_v19 = vmul.f32 0.5, %v396_v27  ;;  %v716_v22 = vand.u32 2147483648, %v1819_v45  ;;  %v392_v27 = vand.u32 2147483648, %v1765_v37 }
  0xf3   :  { %v707_v28 = vmul.f32 %v1207_v39, %v1819_v45  ;;  %894 = vrot.lane.b32.xlu2 %v1857_v43, %s1339_s22  ;;  %846 = vrot.lane.b32.xlu1 %v1857_v43, %s1338_s21  ;;  %v699_v17 = vmul.f32 %v1203_v48, %v698_v12  ;;  %v540_v15 = vadd.f32 %v503_v47, %v1500_v50  ;;  %v1881_v3 = vpop.eup %1208  ;;  %v571_v50 = vpop.permute.xlu2 %570 }
  0xf4   :  { %1210 = vrsqrt.f32 %v1855_v58  ;;  %v378_v54 = vsel %vm377_vm0, %v1727_v63, %v376_v0  ;;  %v407_v24 = vmul.f32 %v1881_v3, %v1840_v36  ;;  %v388_v11 = vmul.f32 %v387_v46, %v1765_v37 }
  0xf5   :  { %v708_v33 = vmul.f32 %v1207_v39, %v707_v28  ;;  %v700_v13 = vmul.f32 %v699_v17, %v1786_v16  ;;  %v381_v10 = vsel %vm379_vm1, %v380_v5, %v378_v54  ;;  %v398_v28 = vsub.f32 1.5, %v397_v19 }
  0xf6   :  { %v408_v26 = vmul.f32 %v1881_v3, %v407_v24  ;;  %v390_v0 = vsel %vm389_vm4, %v1765_v37, %v388_v11  ;;  %vm725_vm6 = vcmp.eq.f32.partialorder %v1855_v58, inf  ;;  %vm727_vm7 = vcmp.eq.f32.partialorder %v1855_v58, 0.0 }
  0xf7   :  { %v709_v59 = vmul.f32 0.5, %v708_v33  ;;  %v702_v48 = vsel %vm701_vm14, %v1786_v16, %v700_v13  ;;  %vm415_vm14 = vcmp.eq.f32.partialorder %v1840_v36, 0.0 }
  0xf8   :  { %v705_v52 = vsel %vm703_vm15, %v704_v40, %v702_v48  ;;  %v399_v40 = vmul.f32 %v1848_v9, %v398_v28  ;;  %v409_v48 = vmul.f32 0.5, %v408_v26 }
  0xf9   :  { %v567_v30 = vpop.permute.xlu1 %566  ;;  %v710_v7 = vsub.f32 1.5, %v709_v59  ;;  %v1887_v1 = vadd.f32 %v705_v52, %v369_v42  ;;  %v393_v52 = vsel %vm391_vm5, %v392_v27, %v390_v0 }
  0xfa   :  { %v1211_v21 = vpop.eup %1210  ;;  %v1885_v51 = vadd.f32 %v567_v30, %v540_v15  ;;  %v505_v60 = vpop.permute.xlu0 %504  ;;  %v728_v30 = vand.u32 2147483648, %v1855_v58 }
  0xfb   :  { %v711_v16 = vmul.f32 %v1207_v39, %v710_v7  ;;  %v719_v41 = vmul.f32 %v1211_v21, %v1855_v58  ;;  %896 = vrot.lane.b32.xlu1 %v1887_v1, %s1339_s22  ;;  %848 = vrot.lane.b32.xlu0 %v1887_v1, %s1338_s21  ;;  %v541_v47 = vadd.f32 %v505_v60, %v1510_v55 }
  0xfc   :  { %1212 = vrsqrt.f32 %v1885_v51  ;;  %v206_v60 = vadd.f32 %v1559_v32, %v1416_v29  ;;  %vm737_vm9 = vcmp.eq.f32.partialorder %v1885_v51, inf  ;;  %vm739_vm11 = vcmp.eq.f32.partialorder %v1885_v51, 0.0 }
  0xfd   :  { %v712_v57 = vmul.f32 %v711_v16, %v1819_v45  ;;  %v720_v2 = vmul.f32 %v1211_v21, %v719_v41  ;;  %v410_v41 = vsub.f32 1.5, %v409_v48 }
  0xff   :  { %v714_v39 = vsel %vm713_vm2, %v1819_v45, %v712_v57  ;;  %v721_v14 = vmul.f32 0.5, %v720_v2  ;;  %v411_v2 = vmul.f32 %v1881_v3, %v410_v41  ;;  %v207_v3 = vadd.f32 %v1852_v8, %v1520_v62 }
 0x100   :  { %v717_v12 = vsel %vm715_vm3, %v716_v22, %v714_v39  ;;  %v404_v22 = vand.u32 2147483648, %v1808_v56 }
 0x101   :  { %v569_v31 = vpop.permute.xlu1 %568  ;;  %v1909_v17 = vadd.f32 %v717_v12, %v381_v10  ;;  %v722_v63 = vsub.f32 1.5, %v721_v14  ;;  %v740_v10 = vand.u32 2147483648, %v1885_v51 }
 0x102   :  { %v1213_v33 = vpop.eup %1212  ;;  %v1912_v38 = vadd.f32 %v569_v31, %v541_v47  ;;  %v507_v23 = vpop.permute.xlu0 %506 }
 0x103   :  { %v542_v13 = vadd.f32 %v507_v23, %v1518_v61  ;;  %850 = vrot.lane.b32.xlu2 %v1909_v17, %s1338_s21  ;;  %v723_v55 = vmul.f32 %v1211_v21, %v722_v63  ;;  %v731_v45 = vmul.f32 %v1213_v33, %v1885_v51  ;;  %898 = vrot.lane.b32.xlu0 %v1909_v17, %s1339_s22  ;;  %v1926_v61 = vpop.permute.xlu2 %510 }
 0x104   :  { %1214 = vrsqrt.f32 %v1912_v38  ;;  %v400_v21 = vmul.f32 %v399_v40, %v1808_v56  ;;  %vm749_vm13 = vcmp.eq.f32.partialorder %v1912_v38, inf  ;;  %v752_v48 = vand.u32 2147483648, %v1912_v38 }
 0x105   :  { %v1924_v59 = vadd.f32 %v571_v50, %v542_v13  ;;  %v724_v44 = vmul.f32 %v723_v55, %v1855_v58  ;;  %v732_v15 = vmul.f32 %v1213_v33, %v731_v45  ;;  %vm751_vm15 = vcmp.eq.f32.partialorder %v1912_v38, 0.0 }
 0x106   :  { %v402_v32 = vsel %vm401_vm8, %v1808_v56, %v400_v21 }
 0x107   :  { %1216 = vrsqrt.f32 %v1924_v59  ;;  %v726_v9 = vsel %vm725_vm6, %v1855_v58, %v724_v44  ;;  %v733_v42 = vmul.f32 0.5, %v732_v15  ;;  %v405_v11 = vsel %vm403_vm10, %v404_v22, %v402_v32 }
 0x108   :  { %v729_v7 = vsel %vm727_vm7, %v728_v30, %v726_v9  ;;  %vm761_vm0 = vcmp.eq.f32.partialorder %v1924_v59, inf  ;;  %vm763_vm3 = vcmp.eq.f32.partialorder %v1924_v59, 0.0 }
 0x109   :  { %v509_v50 = vpop.permute.xlu1 %508  ;;  %v1939_v37 = vadd.f32 %v729_v7, %v393_v52  ;;  %v734_v16 = vsub.f32 1.5, %v733_v42 }
 0x10a   :  { %v1215_v54 = vpop.eup %1214  ;;  %v235_v46 = vpop.permute.xlu0 %234  ;;  %v543_v21 = vadd.f32 %v509_v50, %v1534_v6 }
 0x10b   :  { %v1941_v19 = vadd.f32 %v235_v46, %v206_v60  ;;  %900 = vrot.lane.b32.xlu2 %v1939_v37, %s1339_s22  ;;  %852 = vrot.lane.b32.xlu1 %v1939_v37, %s1338_s21  ;;  %v735_v58 = vmul.f32 %v1213_v33, %v734_v16  ;;  %v743_v29 = vmul.f32 %v1215_v54, %v1912_v38  ;;  %v239_v14 = vpop.permute.xlu2 %238 }
 0x10c   :  { %v412_v33 = vmul.f32 %v411_v2, %v1840_v36 }
 0x10d   :  { %v1217_v5 = vpop.eup %1216  ;;  %1218 = vrsqrt.f32 %v1941_v19  ;;  %v736_v57 = vmul.f32 %v735_v58, %v1885_v51  ;;  %v744_v24 = vmul.f32 %v1215_v54, %v743_v29  ;;  %vm425_vm1 = vcmp.eq.f32.partialorder %v1941_v19, inf }
 0x10e   :  { %v755_v39 = vmul.f32 %v1217_v5, %v1924_v59  ;;  %v414_v44 = vsel %vm413_vm12, %v1840_v36, %v412_v33  ;;  %v428_v22 = vand.u32 2147483648, %v1941_v19  ;;  %vm427_vm2 = vcmp.eq.f32.partialorder %v1941_v19, 0.0 }
 0x10f   :  { %v738_v47 = vsel %vm737_vm9, %v1885_v51, %v736_v57  ;;  %v745_v12 = vmul.f32 0.5, %v744_v24 }
 0x110   :  { %v741_v28 = vsel %vm739_vm11, %v740_v10, %v738_v47  ;;  %v756_v31 = vmul.f32 %v1217_v5, %v755_v39  ;;  %v764_v10 = vand.u32 2147483648, %v1924_v59 }
 0x111   :  { %v237_v63 = vpop.permute.xlu1 %236  ;;  %v1962_v26 = vadd.f32 %v741_v28, %v405_v11  ;;  %v746_v23 = vsub.f32 1.5, %v745_v12 }
 0x112   :  { %v1965_v13 = vadd.f32 %v237_v63, %v207_v3  ;;  %v175_v56 = vpop.permute.xlu0 %174  ;;  %v757_v55 = vmul.f32 0.5, %v756_v31 }
 0x113   :  { %v1219_v45 = vpop.eup %1218  ;;  %v208_v51 = vadd.f32 %v175_v56, %v1546_v18  ;;  %902 = vrot.lane.b32.xlu1 %v1962_v26, %s1339_s22  ;;  %854 = vrot.lane.b32.xlu0 %v1962_v26, %s1338_s21  ;;  %v747_v62 = vmul.f32 %v1215_v54, %v746_v23  ;;  %v416_v18 = vand.u32 2147483648, %v1840_v36  ;;  %v241_v16 = vpop.permute.xlu2 %240 }
 0x114   :  { %1220 = vrsqrt.f32 %v1965_v13  ;;  %v419_v8 = vmul.f32 %v1219_v45, %v1941_v19  ;;  %v758_v0 = vsub.f32 1.5, %v757_v55  ;;  %vm437_vm4 = vcmp.eq.f32.partialorder %v1965_v13, inf }
 0x115   :  { %v1975_v40 = vadd.f32 %v239_v14, %v208_v51  ;;  %v748_v15 = vmul.f32 %v747_v62, %v1912_v38  ;;  %v417_v42 = vsel %vm415_vm14, %v416_v18, %v414_v44  ;;  %v2243_v14 = vld [vmem:[#allocation12_spill] sm:$0xff]  ;;  %vm439_vm6 = vcmp.eq.f32.partialorder %v1965_v13, 0.0 }
 0x116   :  { %v420_v27 = vmul.f32 %v1219_v45, %v419_v8  ;;  %v759_v30 = vmul.f32 %v1217_v5, %v758_v0  ;;  %v544_v47 = vadd.f32 %v1926_v61, %v2243_v14  ;;  %v2244_v0 = vld [vmem:[#allocation13_spill] sm:$0xff] }
 0x117   :  { %1222 = vrsqrt.f32 %v1975_v40  ;;  %v750_v9 = vsel %vm749_vm13, %v1912_v38, %v748_v15  ;;  %vm449_vm8 = vcmp.eq.f32.partialorder %v1975_v40, inf  ;;  %vm451_vm10 = vcmp.eq.f32.partialorder %v1975_v40, 0.0 }
 0x118   :  { %v753_v52 = vsel %vm751_vm15, %v752_v48, %v750_v9  ;;  %v421_v7 = vmul.f32 0.5, %v420_v27  ;;  %v760_v36 = vmul.f32 %v759_v30, %v1924_v59 }
 0x119   :  { %v177_v60 = vpop.permute.xlu1 %176  ;;  %v1987_v41 = vadd.f32 %v753_v52, %v417_v42 }
 0x11a   :  { %v1221_v54 = vpop.eup %1220  ;;  %v209_v46 = vadd.f32 %v177_v60, %v1561_v34  ;;  %v573_v58 = vpop.permute.xlu0 %572  ;;  %v422_v29 = vsub.f32 1.5, %v421_v7  ;;  %v762_v2 = vsel %vm761_vm0, %v1924_v59, %v760_v36  ;;  %vm930_vm0 = vcmask 105472  }
 0x11b   :  { %v1991_v32 = vadd.f32 %v573_v58, %v543_v21  ;;  %904 = vrot.lane.b32.xlu0 %v1987_v41, %s1339_s22  ;;  %856 = vrot.lane.b32.xlu2 %v1987_v41, %s1338_s21  ;;  %v431_v6 = vmul.f32 %v1221_v54, %v1965_v13  ;;  %v765_v28 = vsel %vm763_vm3, %v764_v10, %v762_v2  ;;  %v440_v58 = vand.u32 2147483648, %v1965_v13 }
 0x11c   :  { %v1998_v38 = vadd.f32 %v241_v16, %v209_v46  ;;  %v423_v50 = vmul.f32 %v1219_v45, %v422_v29 }
 0x11d   :  { %v1223_v5 = vpop.eup %1222  ;;  %1224 = vrsqrt.f32 %v1991_v32  ;;  %v432_v34 = vmul.f32 %v1221_v54, %v431_v6  ;;  %vm773_vm5 = vcmp.eq.f32.partialorder %v1991_v32, inf  ;;  %v776_v29 = vand.u32 2147483648, %v1991_v32 }
 0x11e   :  { %1226 = vrsqrt.f32 %v1998_v38  ;;  %v424_v57 = vmul.f32 %v423_v50, %v1941_v19  ;;  %v443_v24 = vmul.f32 %v1223_v5, %v1975_v40  ;;  %vm775_vm7 = vcmp.eq.f32.partialorder %v1991_v32, 0.0 }
 0x11f   :  { %v433_v39 = vmul.f32 0.5, %v432_v34  ;;  %vm461_vm12 = vcmp.eq.f32.partialorder %v1998_v38, inf  ;;  %vm463_vm14 = vcmp.eq.f32.partialorder %v1998_v38, 0.0 }
 0x120   :  { %v426_v12 = vsel %vm425_vm1, %v1941_v19, %v424_v57  ;;  %v444_v31 = vmul.f32 %v1223_v5, %v443_v24  ;;  %vm947_vm1 = vcmask 211968  }
 0x121   :  { %v575_v3 = vpop.permute.xlu1 %574  ;;  %v429_v11 = vsel %vm427_vm2, %v428_v22, %v426_v12  ;;  %v434_v56 = vsub.f32 1.5, %v433_v39  ;;  %v452_v39 = vand.u32 2147483648, %v1975_v40 }
 0x122   :  { %v2014_v63 = vadd.f32 %v575_v3, %v544_v47  ;;  %v513_v33 = vpop.permute.xlu0 %512  ;;  %v2016_v23 = vadd.f32 %v765_v28, %v429_v11  ;;  %v445_v61 = vmul.f32 0.5, %v444_v31 }
 0x123   :  { %v1225_v55 = vpop.eup %1224  ;;  %v435_v19 = vmul.f32 %v1221_v54, %v434_v56  ;;  %v545_v44 = vadd.f32 %v513_v33, %v2244_v0 }
 0x124   :  { %v1227_v45 = vpop.eup %1226  ;;  %1228 = vrsqrt.f32 %v2014_v63  ;;  %906 = vrot.lane.b32.xlu2 %v2016_v23, %s1339_s22  ;;  %858 = vrot.lane.b32.xlu1 %v2016_v23, %s1338_s21  ;;  %v767_v59 = vmul.f32 %v1225_v55, %v1991_v32  ;;  %v446_v18 = vsub.f32 1.5, %v445_v61  ;;  %vm785_vm9 = vcmp.eq.f32.partialorder %v2014_v63, inf }
 0x125   :  { %v455_v62 = vmul.f32 %v1227_v45, %v1998_v38  ;;  %v436_v27 = vmul.f32 %v435_v19, %v1965_v13  ;;  %v788_v47 = vand.u32 2147483648, %v2014_v63  ;;  %vm787_vm11 = vcmp.eq.f32.partialorder %v2014_v63, 0.0 }
 0x126   :  { %v768_v51 = vmul.f32 %v1225_v55, %v767_v59  ;;  %v447_v21 = vmul.f32 %v1223_v5, %v446_v18  ;;  %v464_v61 = vand.u32 2147483648, %v1998_v38  ;;  %v837_v18 = vpop.permute.xlu2 %836 }
 0x127   :  { %v456_v9 = vmul.f32 %v1227_v45, %v455_v62  ;;  %v438_v16 = vsel %vm437_vm4, %v1965_v13, %v436_v27 }
 0x128   :  { %v769_v8 = vmul.f32 0.5, %v768_v51  ;;  %v441_v50 = vsel %vm439_vm6, %v440_v58, %v438_v16  ;;  %v448_v34 = vmul.f32 %v447_v21, %v1975_v40 }
 0x129   :  { %v457_v46 = vmul.f32 0.5, %v456_v9 }
 0x12a   :  { %v1229_v15 = vpop.eup %1228  ;;  %v577_v48 = vpop.permute.xlu0 %576  ;;  %v770_v30 = vsub.f32 1.5, %v769_v8 }
 0x12b   :  { %v609_v42 = vadd.f32 %v577_v48, %v545_v44  ;;  %v779_v52 = vmul.f32 %v1229_v15, %v2014_v63  ;;  %v458_v24 = vsub.f32 1.5, %v457_v46 }
 0x12c   :  { %v771_v7 = vmul.f32 %v1225_v55, %v770_v30 }
 0x12d   :  { %1230 = vrsqrt.f32 %v609_v42  ;;  %v780_v60 = vmul.f32 %v1229_v15, %v779_v52  ;;  %v459_v12 = vmul.f32 %v1227_v45, %v458_v24  ;;  %vm797_vm13 = vcmp.eq.f32.partialorder %v609_v42, inf }
 0x12e   :  { %v772_v54 = vmul.f32 %v771_v7, %v1991_v32  ;;  %v800_v19 = vand.u32 2147483648, %v609_v42  ;;  %vm799_vm15 = vcmp.eq.f32.partialorder %v609_v42, 0.0  ;;  %v839_v27 = vpop.permute.xlu2 %838 }
 0x12f   :  { %v781_v36 = vmul.f32 0.5, %v780_v60  ;;  %v460_v55 = vmul.f32 %v459_v12, %v1998_v38 }
 0x130   :  { %v774_v6 = vsel %vm773_vm5, %v1991_v32, %v772_v54  ;;  %v450_v32 = vsel %vm449_vm8, %v1975_v40, %v448_v34 }
 0x131   :  { %v777_v5 = vsel %vm775_vm7, %v776_v29, %v774_v6  ;;  %v782_v57 = vsub.f32 1.5, %v781_v36  ;;  %v453_v28 = vsel %vm451_vm10, %v452_v39, %v450_v32  ;;  %v462_v40 = vsel %vm461_vm12, %v1998_v38, %v460_v55 }
 0x132   :  { %v2038_v2 = vadd.f32 %v777_v5, %v441_v50  ;;  %v465_v62 = vsel %vm463_vm14, %v464_v61, %v462_v40  ;;  %v932_v6 = vsel %vm930_vm0, %v1680_v4, %v837_v18  ;;  %v933_v5 = vsel %vm930_vm0, %v1721_v35, %v839_v27  ;;  %v1234_v35 = vld [vmem:[#allocation6 + $0x80] sm:$0xff]  ;;  %v52_v27 = vld [vmem:[#allocation3 + $0x10] sm:$0xff] }
 0x133   :  { %v1231_v22 = vpop.eup %1230  ;;  %v783_v10 = vmul.f32 %v1229_v15, %v782_v57 }
 0x134   :  { %908 = vrot.lane.b32.xlu1 %v2038_v2, %s1339_s22  ;;  %860 = vrot.lane.b32.xlu0 %v2038_v2, %s1338_s21  ;;  %v791_v13 = vmul.f32 %v1231_v22, %v609_v42 }
 0x135   :  { %v784_v14 = vmul.f32 %v783_v10, %v2014_v63 }
 0x136   :  { %v792_v3 = vmul.f32 %v1231_v22, %v791_v13  ;;  %v889_v38 = vpop.permute.xlu2 %888 }
 0x137   :  { %v786_v11 = vsel %vm785_vm9, %v2014_v63, %v784_v14  ;;  %v1235_v14 = vld [vmem:[#allocation6 + $0x88] sm:$0xff] }
 0x138   :  { %v789_v31 = vsel %vm787_vm11, %v788_v47, %v786_v11  ;;  %v793_v33 = vmul.f32 0.5, %v792_v3  ;;  %v50_v11 = vld [vmem:[#allocation3] sm:$0xff]  ;;  %v1247_v47 = vld [vmem:[#allocation6 + $0xb8] sm:$0xff] }
 0x139   :  { %v2053_v56 = vadd.f32 %v789_v31, %v453_v28 }
 0x13a   :  { %v794_v59 = vsub.f32 1.5, %v793_v33  ;;  %v1237_v33 = vld [vmem:[#allocation6 + $0x8] sm:$0xff] }
 0x13b   :  { %862 = vrot.lane.b32.xlu2 %v2053_v56, %s1338_s21 }
 0x13c   :  { %910 = vrot.lane.b32.xlu0 %v2053_v56, %s1339_s22  ;;  %v795_v45 = vmul.f32 %v1231_v22, %v794_v59  ;;  %v1238_v59 = vld [vmem:[#allocation6 + $0x90] sm:$0xff] }
 0x13e   :  { %v796_v63 = vmul.f32 %v795_v45, %v609_v42  ;;  %v835_v44 = vpop.permute.xlu1 %834  ;;  %v883_v48 = vpop.permute.xlu0 %882 }
 0x13f   :  { %v931_v58 = vsel %vm930_vm0, %v1684_v49, %v835_v44 }
 0x140   :  { %v798_v51 = vsel %vm797_vm13, %v609_v42, %v796_v63  ;;  %v948_v36 = vsel %vm947_vm1, %v931_v58, %v883_v48 }
 0x141   :  { %v801_v8 = vsel %vm799_vm15, %v800_v19, %v798_v51  ;;  %vm964_vm2 = vcmp.ge.f32.partialorder %v948_v36, 0.5  ;;  %vm980_vm3 = vcmp.le.f32.partialorder %v948_v36, 1.5 }
 0x142   :  { %v2064_v0 = vadd.f32 %v801_v8, %v465_v62  ;;  %vm996_vm6 = vmand %vm964_vm2, %vm980_vm3  ;;  %v1239_v8 = vld [vmem:[#allocation6 + $0x10] sm:$0xff] }
 0x143   :  { %v1012_v10 = vsel %vm996_vm6, %v1234_v35, 0.0 }
 0x144   :  { %912 = vrot.lane.b32.xlu2 %v2064_v0, %s1339_s22  ;;  %864 = vrot.lane.b32.xlu1 %v2064_v0, %s1338_s21 }
 0x145   :  { %v845_v7 = vpop.permute.xlu2 %844 }
 0x146   :  { %v885_v15 = vpop.permute.xlu1 %884  ;;  %v887_v9 = vpop.permute.xlu0 %886  ;;  %v936_v28 = vsel %vm930_vm0, %v1821_v20, %v845_v7  ;;  %v1250_v20 = vld [vmem:[#allocation6 + $0xc0] sm:$0xff] }
 0x147   :  { %v949_v50 = vsel %vm947_vm1, %v932_v6, %v885_v15  ;;  %v950_v49 = vsel %vm947_vm1, %v933_v5, %v887_v9  ;;  %v1243_v5 = vld [vmem:[#allocation6 + $0x20] sm:$0xff] }
 0x148   :  { %vm965_vm4 = vcmp.ge.f32.partialorder %v949_v50, 0.5  ;;  %vm981_vm5 = vcmp.le.f32.partialorder %v949_v50, 1.5  ;;  %vm966_vm8 = vcmp.ge.f32.partialorder %v950_v49, 0.5  ;;  %vm982_vm9 = vcmp.le.f32.partialorder %v950_v49, 1.5  ;;  %v53_v50 = vld [vmem:[#allocation3 + $0x18] sm:$0xff]  ;;  %v1244_v49 = vld [vmem:[#allocation6 + $0xa8] sm:$0xff] }
 0x149   :  { %vm2085_vm7 = vmand %vm965_vm4, %vm981_vm5 }
 0x14a   :  { %vm2093_vm10 = vmand %vm966_vm8, %vm982_vm9 }
 0x14b   :  { %v1014_v45 = vsel %vm2093_vm10, %v1238_v59, 0.0 }
 0x14c   :  { %v1030_v44 = vadd.f32 %v1239_v8, %v1014_v45 }
 0x14d   :  { %v895_v16 = vpop.permute.xlu2 %894 }
 0x14e   :  { %v841_v30 = vpop.permute.xlu1 %840  ;;  %v1046_v58 = vsub.f32 %v52_v27, %v1030_v44  ;;  %v57_v44 = vld [vmem:[#allocation3 + $0x38] sm:$0xff] }
 0x14f   :  { %v934_v24 = vsel %vm930_vm0, %v1756_v25, %v841_v30  ;;  %v1013_v25 = vsel %vm2085_vm7, %v1235_v14, 0.0  ;;  %vm48_vm7 = vcmask 318464   ;;  %v1240_v30 = vld [vmem:[#allocation6 + $0x98] sm:$0xff]  ;;  %v1246_v14 = vld [vmem:[#allocation6 + $0x28] sm:$0xff] }
 0x150   :  { %v951_v13 = vsel %vm947_vm1, %v934_v24, %v889_v38  ;;  %v1029_v55 = vadd.f32 %v1237_v33, %v1013_v25  ;;  %v1241_v38 = vld [vmem:[#allocation6 + $0xa0] sm:$0xff]  ;;  %v1062_v59 = vmul.f32 %v1046_v58, %v1046_v58 }
 0x151   :  { %vm967_vm11 = vcmp.ge.f32.partialorder %v951_v13, 0.5  ;;  %vm983_vm12 = vcmp.le.f32.partialorder %v951_v13, 1.5 }
 0x152   :  { %vm2108_vm15 = vmand %vm967_vm11, %vm983_vm12  ;;  %v1081_v27 = vsel %vm48_vm7, %v1062_v59, 0.0 }
 0x153   :  { %v1015_v9 = vsel %vm2108_vm15, %v1240_v30, 0.0 }
 0x155   :  { %v843_v52 = vpop.permute.xlu0 %842 }
 0x156   :  { %v891_v42 = vpop.permute.xlu1 %890  ;;  %v935_v4 = vsel %vm930_vm0, %v1788_v53, %v843_v52  ;;  %v1236_v53 = vld [vmem:[#allocation6] sm:$0xff] }
 0x157   :  { %v952_v39 = vsel %vm947_vm1, %v935_v4, %v891_v42  ;;  %v1028_v12 = vadd.f32 %v1236_v53, %v1012_v10  ;;  %v1245_v4 = vld [vmem:[#allocation6 + $0xb0] sm:$0xff]  ;;  %v54_v10 = vld [vmem:[#allocation3 + $0x20] sm:$0xff] }
 0x158   :  { %vm968_vm13 = vcmp.ge.f32.partialorder %v952_v39, 0.5  ;;  %vm984_vm14 = vcmp.le.f32.partialorder %v952_v39, 1.5 }
 0x159   :  { %v1044_v51 = vsub.f32 %v50_v11, %v1028_v12  ;;  %vm2113_vm2 = vmand %vm968_vm13, %vm984_vm14  ;;  %v55_v11 = vld [vmem:[#allocation3 + $0x28] sm:$0xff] }
 0x15a   :  { %v1016_v52 = vsel %vm2113_vm2, %v1241_v38, 0.0 }
 0x15d   :  { %v893_v60 = vpop.permute.xlu0 %892  ;;  %v2072_v29 = vpop.permute.xlu2 %850 }
 0x15e   :  { %v953_v40 = vsel %vm947_vm1, %v936_v28, %v893_v60  ;;  %v939_v42 = vsel %vm930_vm0, %v1909_v17, %v2072_v29  ;;  %v1060_v17 = vmul.f32 %v1044_v51, %v1044_v51  ;;  %v1242_v29 = vld [vmem:[#allocation6 + $0x18] sm:$0xff]  ;;  %v1248_v28 = vld [vmem:[#allocation6 + $0x30] sm:$0xff] }
 0x15f   :  { %vm969_vm3 = vcmp.ge.f32.partialorder %v953_v40, 0.5  ;;  %vm985_vm4 = vcmp.le.f32.partialorder %v953_v40, 1.5  ;;  %v1031_v36 = vadd.f32 %v1242_v29, %v1015_v9  ;;  %v56_v40 = vld [vmem:[#allocation3 + $0x30] sm:$0xff]  ;;  %v1252_v9 = vld [vmem:[#allocation6 + $0x40] sm:$0xff] }
 0x160   :  { %vm2128_vm8 = vmand %vm969_vm3, %vm985_vm4 }
 0x161   :  { %v1047_v39 = vsub.f32 %v53_v50, %v1031_v36 }
 0x163   :  { %v1063_v62 = vmul.f32 %v1047_v39, %v1047_v39  ;;  %v1257_v39 = vld [vmem:[#allocation6 + $0xe0] sm:$0xff] }
 0x165   :  { %v847_v21 = vpop.permute.xlu1 %846  ;;  %v901_v32 = vpop.permute.xlu2 %900  ;;  %v1083_v29 = vsel %vm48_vm7, %v1063_v62, 0.0  ;;  %v1261_v62 = vld [vmem:[#allocation6 + $0x68] sm:$0xff] }
 0x166   :  { %v937_v3 = vsel %vm930_vm0, %v1857_v43, %v847_v21  ;;  %v51_v43 = vld [vmem:[#allocation3 + $0x8] sm:$0xff]  ;;  %v58_v21 = vld [vmem:[#allocation3 + $0x40] sm:$0xff] }
 0x167   :  { %v954_v19 = vsel %vm947_vm1, %v937_v3, %v895_v16  ;;  %v1045_v15 = vsub.f32 %v51_v43, %v1029_v55  ;;  %v1078_v55 = vsel %vm48_vm7, %v1060_v17, 0.0 }
 0x168   :  { %vm970_vm5 = vcmp.ge.f32.partialorder %v954_v19, 0.5  ;;  %vm986_vm6 = vcmp.le.f32.partialorder %v954_v19, 1.5 }
 0x169   :  { %vm2133_vm11 = vmand %vm970_vm5, %vm986_vm6 }
 0x16a   :  { %v1018_v22 = vsel %vm2133_vm11, %v1245_v4, 0.0 }
 0x16d   :  { %v849_v54 = vpop.permute.xlu0 %848  ;;  %v897_v46 = vpop.permute.xlu1 %896 }
 0x16e   :  { %v938_v63 = vsel %vm930_vm0, %v1887_v1, %v849_v54  ;;  %v1340_v54 = vmov 0.0  }
 0x16f   :  { %v955_v1 = vsel %vm947_vm1, %v938_v63, %v897_v46  ;;  %49 = vst.msk [vmem:[#allocation2] sm:$0xff] %vm48_vm7, %v1340_v54  ;;  %v1061_v46 = vmul.f32 %v1045_v15, %v1045_v15  ;;  %v1254_v54 = vld [vmem:[#allocation6 + $0xd0] sm:$0xff] }
 0x170   :  { %vm971_vm9 = vcmp.ge.f32.partialorder %v955_v1, 0.5  ;;  %vm987_vm10 = vcmp.le.f32.partialorder %v955_v1, 1.5  ;;  %v1251_v1 = vld [vmem:[#allocation6 + $0xc8] sm:$0xff] }
 0x171   :  { %vm2145_vm12 = vmand %vm971_vm9, %vm987_vm10 }
 0x172   :  { %v1019_v53 = vsel %vm2145_vm12, %v1247_v47, 0.0 }
 0x175   :  { %v899_v57 = vpop.permute.xlu0 %898  ;;  %v857_v18 = vpop.permute.xlu2 %856 }
 0x176   :  { %v942_v13 = vsel %vm930_vm0, %v1987_v41, %v857_v18  ;;  %v1079_v41 = vsel %vm48_vm7, %v1061_v46, 0.0 }
 0x177   :  { %v1080_v51 = vadd.f32 %v1079_v41, %v1078_v55  ;;  %v1260_v55 = vld [vmem:[#allocation6 + $0x60] sm:$0xff] }
 0x179   :  { %v1082_v58 = vadd.f32 %v1081_v27, %v1080_v51 }
 0x17d   :  { %v853_v34 = vpop.permute.xlu1 %852 }
 0x17e   :  { %v940_v48 = vsel %vm930_vm0, %v1939_v37, %v853_v34  ;;  %v956_v37 = vsel %vm947_vm1, %v939_v42, %v899_v57  ;;  %v1032_v34 = vadd.f32 %v1243_v5, %v1016_v52  ;;  %v1017_v57 = vsel %vm2128_vm8, %v1244_v49, 0.0  ;;  %v907_v33 = vpop.permute.xlu2 %906  ;;  %v1255_v49 = vld [vmem:[#allocation6 + $0xd8] sm:$0xff] }
 0x17f   :  { %v957_v60 = vsel %vm947_vm1, %v940_v48, %v901_v32  ;;  %vm972_vm13 = vcmp.ge.f32.partialorder %v956_v37, 0.5  ;;  %vm988_vm14 = vcmp.le.f32.partialorder %v956_v37, 1.5  ;;  %v1033_v25 = vadd.f32 %v1246_v14, %v1017_v57 }
 0x180   :  { %vm973_vm15 = vcmp.ge.f32.partialorder %v957_v60, 0.5  ;;  %vm989_vm2 = vcmp.le.f32.partialorder %v957_v60, 1.5  ;;  %vm2160_vm3 = vmand %vm972_vm13, %vm988_vm14  ;;  %v1048_v45 = vsub.f32 %v54_v10, %v1032_v34  ;;  %v1253_v60 = vld [vmem:[#allocation6 + $0x48] sm:$0xff] }
 0x181   :  { %vm2168_vm4 = vmand %vm973_vm15, %vm989_vm2  ;;  %v1020_v19 = vsel %vm2160_vm3, %v1250_v20, 0.0  ;;  %v1049_v8 = vsub.f32 %v55_v11, %v1033_v25  ;;  %v61_v11 = vld [vmem:[#allocation3 + $0x58] sm:$0xff]  ;;  %v62_v20 = vld [vmem:[#allocation3 + $0x60] sm:$0xff] }
 0x182   :  { %v1021_v18 = vsel %vm2168_vm4, %v1251_v1, 0.0  ;;  %v1064_v30 = vmul.f32 %v1048_v45, %v1048_v45  ;;  %v1036_v38 = vadd.f32 %v1252_v9, %v1020_v19  ;;  %v63_v1 = vld [vmem:[#allocation3 + $0x68] sm:$0xff]  ;;  %v64_v9 = vld [vmem:[#allocation3 + $0x70] sm:$0xff] }
 0x183   :  { %v1065_v36 = vmul.f32 %v1049_v8, %v1049_v8 }
 0x185   :  { %v855_v31 = vpop.permute.xlu0 %854  ;;  %v903_v61 = vpop.permute.xlu1 %902  ;;  %v1087_v47 = vsel %vm48_vm7, %v1065_v36, 0.0 }
 0x186   :  { %v941_v16 = vsel %vm930_vm0, %v1962_v26, %v855_v31  ;;  %v1052_v26 = vsub.f32 %v58_v21, %v1036_v38  ;;  %v1263_v38 = vld [vmem:[#allocation6 + $0x70] sm:$0xff] }
 0x187   :  { %v958_v35 = vsel %vm947_vm1, %v941_v16, %v903_v61  ;;  %v1249_v61 = vld [vmem:[#allocation6 + $0x38] sm:$0xff]  ;;  %v1037_v16 = vadd.f32 %v1253_v60, %v1021_v18 }
 0x188   :  { %vm974_vm5 = vcmp.ge.f32.partialorder %v958_v35, 0.5  ;;  %vm990_vm6 = vcmp.le.f32.partialorder %v958_v35, 1.5  ;;  %v1035_v43 = vadd.f32 %v1249_v61, %v1019_v53  ;;  %v1084_v35 = vadd.f32 %v1083_v29, %v1082_v58  ;;  %v1258_v53 = vld [vmem:[#allocation6 + $0x58] sm:$0xff] }
 0x189   :  { %vm2180_vm10 = vmand %vm974_vm5, %vm990_vm6  ;;  %v1068_v31 = vmul.f32 %v1052_v26, %v1052_v26  ;;  %v1264_v26 = vld [vmem:[#allocation6 + $0xf8] sm:$0xff] }
 0x18a   :  { %v1051_v37 = vsub.f32 %v57_v44, %v1035_v43  ;;  %v1022_v17 = vsel %vm2180_vm10, %v1254_v54, 0.0 }
 0x18b   :  { %v1093_v18 = vsel %vm48_vm7, %v1068_v31, 0.0 }
 0x18c   :  { %v1067_v10 = vmul.f32 %v1051_v37, %v1051_v37 }
 0x18d   :  { %v905_v24 = vpop.permute.xlu0 %904 }
 0x18e   :  { %v959_v3 = vsel %vm947_vm1, %v942_v13, %v905_v24  ;;  %v1256_v24 = vld [vmem:[#allocation6 + $0x50] sm:$0xff]  ;;  %v1091_v61 = vsel %vm48_vm7, %v1067_v10, 0.0 }
 0x18f   :  { %vm975_vm8 = vcmp.ge.f32.partialorder %v959_v3, 0.5  ;;  %vm991_vm9 = vcmp.le.f32.partialorder %v959_v3, 1.5  ;;  %v1038_v4 = vadd.f32 %v1256_v24, %v1022_v17 }
 0x190   :  { %vm2187_vm13 = vmand %vm975_vm8, %vm991_vm9 }
 0x191   :  { %v1023_v57 = vsel %vm2187_vm13, %v1255_v49, 0.0 }
 0x192   :  { %v1039_v12 = vadd.f32 %v1258_v53, %v1023_v57 }
 0x194   :  { %v1055_v51 = vsub.f32 %v61_v11, %v1039_v12  ;;  %v1341_v11 = vmov 4992.0  }
 0x195   :  { %v863_v25 = vpop.permute.xlu2 %862  ;;  %1232 = vrcp.f32 %v1341_v11 }
 0x196   :  { %v859_v6 = vpop.permute.xlu1 %858  ;;  %v945_v45 = vsel %vm930_vm0, %v2053_v56, %v863_v25  ;;  %v1076_v25 = vld [vmem:[#allocation2] sm:$0xff] }
 0x197   :  { %v943_v32 = vsel %vm930_vm0, %v2016_v23, %v859_v6  ;;  %v1034_v23 = vadd.f32 %v1248_v28, %v1018_v22  ;;  %v59_v6 = vld [vmem:[#allocation3 + $0x48] sm:$0xff]  ;;  %v1265_v22 = vld [vmem:[#allocation6 + $0x78] sm:$0xff] }
 0x198   :  { %v960_v63 = vsel %vm947_vm1, %v943_v32, %v907_v33  ;;  %v1053_v13 = vsub.f32 %v59_v6, %v1037_v16  ;;  %v60_v32 = vld [vmem:[#allocation3 + $0x50] sm:$0xff]  ;;  %v1259_v28 = vld [vmem:[#allocation6 + $0xe8] sm:$0xff] }
 0x199   :  { %v1050_v48 = vsub.f32 %v56_v40, %v1034_v23  ;;  %vm976_vm11 = vcmp.ge.f32.partialorder %v960_v63, 0.5  ;;  %vm992_vm12 = vcmp.le.f32.partialorder %v960_v63, 1.5  ;;  %v1054_v33 = vsub.f32 %v60_v32, %v1038_v4 }
 0x19a   :  { %vm2198_vm14 = vmand %vm976_vm11, %vm992_vm12  ;;  %v1069_v43 = vmul.f32 %v1053_v13, %v1053_v13 }
 0x19b   :  { %v1066_v34 = vmul.f32 %v1050_v48, %v1050_v48  ;;  %v1024_v14 = vsel %vm2198_vm14, %v1257_v39, 0.0  ;;  %v1070_v15 = vmul.f32 %v1054_v33, %v1054_v33  ;;  %v1262_v48 = vld [vmem:[#allocation6 + $0xf0] sm:$0xff] }
 0x19c   :  { %v1040_v59 = vadd.f32 %v1260_v55, %v1024_v14 }
 0x19d   :  { %v1089_v41 = vsel %vm48_vm7, %v1066_v34, 0.0  ;;  %v1097_v60 = vsel %vm48_vm7, %v1070_v15, 0.0 }
 0x19e   :  { %v1056_v56 = vsub.f32 %v62_v20, %v1040_v59  ;;  %v913_v58 = vpop.permute.xlu2 %912 }
 0x1a0   :  { %v1072_v16 = vmul.f32 %v1056_v56, %v1056_v56 }
 0x1a2   :  { %v1101_v34 = vsel %vm48_vm7, %v1072_v16, 0.0 }
 0x1a6   :  { %v909_v42 = vpop.permute.xlu1 %908  ;;  %v861_v7 = vpop.permute.xlu0 %860 }
 0x1a7   :  { %v944_v46 = vsel %vm930_vm0, %v2038_v2, %v861_v7  ;;  %v1085_v2 = vsel %vm48_vm7, %v1064_v30, 0.0  ;;  %v1071_v7 = vmul.f32 %v1055_v51, %v1055_v51 }
 0x1a8   :  { %v961_v5 = vsel %vm947_vm1, %v944_v46, %v909_v42  ;;  %v1086_v3 = vadd.f32 %v1085_v2, %v1084_v35  ;;  %v1095_v42 = vsel %vm48_vm7, %v1069_v43, 0.0  ;;  %v65_v2 = vld [vmem:[#allocation3 + $0x78] sm:$0xff] }
 0x1a9   :  { %vm977_vm15 = vcmp.ge.f32.partialorder %v961_v5, 0.5  ;;  %vm993_vm2 = vcmp.le.f32.partialorder %v961_v5, 1.5  ;;  %v1099_v36 = vsel %vm48_vm7, %v1071_v7, 0.0 }
 0x1aa   :  { %vm2206_vm3 = vmand %vm977_vm15, %vm993_vm2  ;;  %v1088_v63 = vadd.f32 %v1087_v47, %v1086_v3 }
 0x1ab   :  { %v1025_v23 = vsel %vm2206_vm3, %v1259_v28, 0.0  ;;  %v1233_v28 = vpop.eup %1232 }
 0x1ac   :  { %v1041_v8 = vadd.f32 %v1261_v62, %v1025_v23  ;;  %v1090_v44 = vadd.f32 %v1089_v41, %v1088_v63  ;;  %v1126_v23 = vmul.f32 4992.0, %v1233_v28 }
 0x1ae   :  { %v911_v40 = vpop.permute.xlu0 %910  ;;  %v1092_v30 = vadd.f32 %v1091_v61, %v1090_v44  ;;  %v1057_v37 = vsub.f32 %v63_v1, %v1041_v8  ;;  %v1127_v31 = vsub.f32 1.0, %v1126_v23 }
 0x1af   :  { %v962_v19 = vsel %vm947_vm1, %v945_v45, %v911_v40 }
 0x1b0   :  { %vm978_vm4 = vcmp.ge.f32.partialorder %v962_v19, 0.5  ;;  %vm994_vm5 = vcmp.le.f32.partialorder %v962_v19, 1.5  ;;  %v1094_v21 = vadd.f32 %v1093_v18, %v1092_v30  ;;  %v1073_v6 = vmul.f32 %v1057_v37, %v1057_v37 }
 0x1b1   :  { %vm1010_vm6 = vmand %vm978_vm4, %vm994_vm5  ;;  %v1128_v45 = vmul.f32 %v1233_v28, %v1127_v31 }
 0x1b2   :  { %v1026_v27 = vsel %vm1010_vm6, %v1262_v48, 0.0  ;;  %v1096_v46 = vadd.f32 %v1095_v42, %v1094_v21  ;;  %v1103_v4 = vsel %vm48_vm7, %v1073_v6, 0.0 }
 0x1b3   :  { %v1042_v52 = vadd.f32 %v1263_v38, %v1026_v27  ;;  %v1129_v61 = vadd.f32 %v1233_v28, %v1128_v45 }
 0x1b4   :  { %v1098_v5 = vadd.f32 %v1097_v60, %v1096_v46 }
 0x1b5   :  { %v1058_v54 = vsub.f32 %v64_v9, %v1042_v52 }
 0x1b6   :  { %v865_v17 = vpop.permute.xlu1 %864  ;;  %v1100_v57 = vadd.f32 %v1099_v36, %v1098_v5 }
 0x1b7   :  { %v946_v29 = vsel %vm930_vm0, %v2064_v0, %v865_v17  ;;  %v1074_v49 = vmul.f32 %v1058_v54, %v1058_v54  ;;  %vm1130_vm0 = vweird.f32 %v1233_v28 }
 0x1b8   :  { %v963_v50 = vsel %vm947_vm1, %v946_v29, %v913_v58  ;;  %v1102_v35 = vadd.f32 %v1101_v34, %v1100_v57  ;;  %v1131_v19 = vsel %vm1130_vm0, %v1233_v28, %v1129_v61 }
 0x1b9   :  { %vm979_vm8 = vcmp.ge.f32.partialorder %v963_v50, 0.5  ;;  %vm995_vm9 = vcmp.le.f32.partialorder %v963_v50, 1.5  ;;  %v1105_v10 = vsel %vm48_vm7, %v1074_v49, 0.0 }
 0x1ba   :  { %vm1011_vm10 = vmand %vm979_vm8, %vm995_vm9  ;;  %v1104_v32 = vadd.f32 %v1103_v4, %v1102_v35 }
 0x1bb   :  { %v1027_v24 = vsel %vm1011_vm10, %v1264_v26, 0.0 }
 0x1bc   :  { %v1043_v0 = vadd.f32 %v1265_v22, %v1027_v24  ;;  %v1106_v14 = vadd.f32 %v1105_v10, %v1104_v32 }
 0x1be   :  { %v1059_v13 = vsub.f32 %v65_v2, %v1043_v0 }
 0x1c0   :  { %v1075_v39 = vmul.f32 %v1059_v13, %v1059_v13 }
 0x1c2   :  { %v1107_v47 = vsel %vm48_vm7, %v1075_v39, 0.0 }
 0x1c3   :  { %v1108_v53 = vadd.f32 %v1107_v47, %v1106_v14 }
 0x1c5   :  { %v1109_v12 = vadd.f32 %v1108_v53, %v1076_v25 }
 0x1c7   :  { %1110 = vst.msk [vmem:[#allocation2] sm:$0xff] %vm48_vm7, %v1109_v12 }
 0x1ce   :  { %v1114_v3 = vld [vmem:[#allocation2] sm:$0xff] }
 0x1cf   :  { %v1115_v41 = vsel %vm48_vm7, %v1114_v3, 0.0 }
 0x1d0   :  { %1116 = vadd.xlane.f32.xlu0 %v1115_v41 }
 0x243   :  { %v1117_v33 = vpop.xlane.xlu0 %1116 }
 0x244   :  { %v1118_v55 = vrot.slane %v1117_v33, 4 }
 0x246   :  { %v1119_v59 = vadd.f32 %v1118_v55, %v1117_v33 }
 0x248   :  { %v1120_v40 = vrot.slane %v1119_v59, 2 }
 0x24a   :  { %v1121_v63 = vadd.f32 %v1120_v40, %v1119_v59 }
 0x24c   :  { %v1122_v43 = vrot.slane %v1121_v63, 1 }
 0x24e   :  { %v1123_v20 = vadd.f32 %v1122_v43, %v1121_v63 }
 0x250   :  { %1153 = vpush %v1123_v20 }
 0x251   :  { %1155 = vpush %v1131_v19 }
 0x281   :  { %s1154_s26 = spop %1153 }
 0x282   :  { %s1156_s27 = spop %1155 }
 0x283   :  { %s1133_s28 = smul.f32 %s1156_s27, %s1154_s26 }
 0x285   :  { %1135 = sst [smem:[#allocation8]] %s1133_s28 }
 0x286   :  { %1144 = dma.smem_to_hbm %s1342_s29, 16, %s1142_s25, [#allocation5]  }
 0x287   :  { %1330 = dma.done.wait [#allocation5], 16  }
 0x288   :  { %1331 = vsyncadd [#allocation5], 4294967280 }
 0x289   :  { %1149 = sfence }
 0x28a   :  { %1150 = vsyncpa [#allocation4], 1 }
 0x28b   :  { %1151 = vsyncpa [#allocation7], 1 }
 0x28c   :  { %1152 = vsyncpa [#allocation5], 1 }

</bundles_post_ra>
